<compile_context>
chip_gen: v7x
topology: tpu7x:2x2x1
jax: 0.10.0
libtpu: 0.0.40
codegen_flags: <defaults>
</compile_context>

<pallas_src>
import numpy as np
import jax
import jax.numpy as jnp
from jax.experimental import pallas as pl
from jax.experimental.pallas import tpu as pltpu

NUM_CH_DEC = np.array([4, 4, 6, 8, 16])
IN_CH = 4
PALLAS_MIN_ROWS = 2048            # below this many GEMM rows, fused XLA math wins
TM_MAX = 8192                     # row-tile upper bound (amortizes ~0.35us/step)
IN_BLOCK_BYTES = 4 * 1024 * 1024  # target per-step input-tile footprint

_ACTS = {
    None: lambda v: v,
    "relu": lambda v: jnp.maximum(v, 0.0),
    "tanh": jnp.tanh,
}


def _round_up(x, m):
    return (x + m - 1) // m * m


def _pow2_floor(x):
    return 1 << (max(int(x), 1).bit_length() - 1)


# ---------------------------------------------------------------------------
# Pallas fused GEMM: y = act(x @ w_scalefolded + shift), optionally fused with
# an 8-slab max (2x2x2 pool) or 8 per-phase weight sets (transposed conv).
# ---------------------------------------------------------------------------
def fused_gemm(xs, ws, shift, act, *, mode, out_dtype=jnp.bfloat16,
               tm_max=TM_MAX, min_rows=PALLAS_MIN_ROWS):
    """Fused GEMM + (folded-BN shift / bias) + activation epilogue.

    mode == "pool":  xs (P, M, K), ws (K, N)    -> (M, N)
                     out = act(max_p(xs[p] @ ws) + shift)     # fused 2x2x2 maxpool
    mode == "multi": xs (M, K),    ws (P, K, N) -> (P, M, N)
                     out[p] = act(xs @ ws[p] + shift)         # fused sub-pixel phases
    BN scale must already be folded into ws.  Operands are bf16 (MXU native),
    accumulation and the epilogue run in f32, outputs are `out_dtype`.
    """
    act_fn = _ACTS[act]
    xs = xs.astype(jnp.bfloat16)
    ws = ws.astype(jnp.bfloat16)
    shift2 = shift.astype(jnp.float32).reshape(1, -1)

    if mode == "pool":
        P, M, K = xs.shape
        N = ws.shape[-1]
    else:
        M, K = xs.shape
        P, _, N = ws.shape
    work_rows = P * M

    if work_rows < min_rows or M % 8:
        # Tiny layer: pallas_call fixed cost dominates -> same fused math in XLA.
        if mode == "pool":
            y = jnp.einsum("pmk,kn->pmn", xs, ws,
                           preferred_element_type=jnp.float32)
            return act_fn(jnp.max(y, axis=0) + shift2).astype(out_dtype)
        y = jnp.einsum("mk,pkn->pmn", xs, ws,
                       preferred_element_type=jnp.float32)
        return act_fn(y + shift2[None]).astype(out_dtype)

    # Row tile: biggest tile that keeps the input block ~IN_BLOCK_BYTES, while
    # leaving >= 2 grid steps so v7x's two TensorCores split the work evenly.
    row_bytes = (P if mode == "pool" else 1) * K * 2
    tm = min(_pow2_floor(max(IN_BLOCK_BYTES // row_bytes, 512)), tm_max, M)
    if M // tm < 2 and M >= 16:
        tm = _round_up(M // 2, 8)
    tm = max(tm, 8)
    Mp = _round_up(M, tm)
    grid_m = Mp // tm
    if Mp != M:
        pad = ((0, 0), (0, Mp - M), (0, 0)) if mode == "pool" else ((0, Mp - M), (0, 0))
        xs = jnp.pad(xs, pad)

    cparams = pltpu.CompilerParams(
        dimension_semantics=("parallel",),
        vmem_limit_bytes=32 * 1024 * 1024,   # explicit: v5e scoped default is 16 MiB
    )

    if mode == "pool":
        def kernel(x_ref, w_ref, b_ref, o_ref):
            w = w_ref[...]
            acc = jnp.dot(x_ref[0], w, preferred_element_type=jnp.float32)
            for p in range(1, P):        # static unroll: max-pool fused over 8 slabs
                acc = jnp.maximum(
                    acc, jnp.dot(x_ref[p], w, preferred_element_type=jnp.float32))
            o_ref[...] = act_fn(acc + b_ref[...]).astype(o_ref.dtype)

        out = pl.pallas_call(
            kernel,
            out_shape=jax.ShapeDtypeStruct((Mp, N), out_dtype),
            grid=(grid_m,),
            in_specs=[
                pl.BlockSpec((P, tm, K), lambda i: (0, i, 0)),  # 8 pool-phase patch slabs
                pl.BlockSpec((K, N), lambda i: (0, 0)),         # scale-folded weights
                pl.BlockSpec((1, N), lambda i: (0, 0)),         # folded BN shift
            ],
            out_specs=pl.BlockSpec((tm, N), lambda i: (i, 0)),  # true channel width
            compiler_params=cparams,
        )(xs, ws, shift2)
        return out if Mp == M else out[:M]

    def kernel(x_ref, w_ref, b_ref, o_ref):
        xv = x_ref[...]
        b = b_ref[...]
        for p in range(P):               # static unroll over sub-pixel phases
            y = jnp.dot(xv, w_ref[p], preferred_element_type=jnp.float32)
            o_ref[p] = act_fn(y + b).astype(o_ref.dtype)

    out = pl.pallas_call(
        kernel,
        out_shape=jax.ShapeDtypeStruct((P, Mp, N), out_dtype),
        grid=(grid_m,),
        in_specs=[
            pl.BlockSpec((tm, K), lambda i: (i, 0)),            # shared patch tile (read once)
            pl.BlockSpec((P, K, N), lambda i: (0, 0, 0)),       # per-phase weights
            pl.BlockSpec((1, N), lambda i: (0, 0)),
        ],
        out_specs=pl.BlockSpec((P, tm, N), lambda i: (0, i, 0)),
        compiler_params=cparams,
    )(xs, ws, shift2)
    return out if Mp == M else out[:, :M]


# ---------------------------------------------------------------------------
# Conv building blocks (im2col glue in XLA + fused Pallas GEMM)
# ---------------------------------------------------------------------------
def conv3d_fused(x, w, scale, shift, act, *, pool=False, out_dtype=jnp.bfloat16):
    """3x3x3 stride-1 'same' conv + folded BN/bias + activation; pool=True also
    fuses the following 2x2x2 / stride-2 max pool into the same GEMM kernel.
    x: (B, D, H, W, Cin) channels-last; w: (3, 3, 3, Cin, Cout).
    # TODO(synk): im2col patches are still materialized by XLA in HBM (bf16);
    # moving the patch extraction in-kernel via halo'd VMEM tiles is the next cut.
    """
    B, D, H, W, Cin = x.shape
    Cout = w.shape[-1]
    K = 27 * Cin
    wmat = (w * scale).reshape(K, Cout)          # fold BN scale into weights (f32)
    xp = jnp.pad(x.astype(jnp.bfloat16), ((0, 0), (1, 1), (1, 1), (1, 1), (0, 0)))

    if pool:
        assert D % 2 == 0 and H % 2 == 0 and W % 2 == 0
        # Patch matrix built directly in pool-phase-major order (one slab per
        # 2x2x2 pool-window member): no reorder/transpose pass in HBM, and the
        # kernel max-reduces the 8 slabs in VMEM.
        slabs = []
        for dd in (0, 1):
            for hh in (0, 1):
                for ww in (0, 1):
                    taps = [xp[:, dd + kd:dd + kd + D:2,
                                  hh + kh:hh + kh + H:2,
                                  ww + kw:ww + kw + W:2, :]
                            for kd in range(3) for kh in range(3) for kw in range(3)]
                    slabs.append(jnp.concatenate(taps, axis=-1).reshape(-1, K))
        xs = jnp.stack(slabs, axis=0)                     # (8, B*D/2*H/2*W/2, K)
        y = fused_gemm(xs, wmat, shift, act, mode="pool", out_dtype=out_dtype)
        return y.reshape(B, D // 2, H // 2, W // 2, Cout)

    taps = [xp[:, kd:kd + D, kh:kh + H, kw:kw + W, :]
            for kd in range(3) for kh in range(3) for kw in range(3)]
    pat = jnp.concatenate(taps, axis=-1).reshape(-1, K)   # (B*D*H*W, K)
    y = fused_gemm(pat, wmat[None], shift, act, mode="multi", out_dtype=out_dtype)
    return y[0].reshape(B, D, H, W, Cout)


def convtranspose3d_fused(x, w, scale, shift, act, *, out_dtype=jnp.bfloat16):
    """k=3, s=2 transposed conv doubling every spatial dim (dense equivalent of
    ME.MinkowskiConvolutionTranspose on a full grid).  Computed as 8 fused
    sub-pixel phases that share one 2x2x2-neighbourhood patch matrix:
        out[b, 2d+pd, 2h+ph, 2w+pw] = sum_{s in {0,1}^3} x[b, d+sd, h+sh, w+sw] . Wp[s]
    which is exactly zero-stuff-by-2 + 3x3x3 'same' conv with w (taps that would
    hit stuffed zeros get zero weight blocks).  All 8 phases run in ONE
    pallas_call and read each patch tile once.
    # TODO(synk): strict nn.ConvTranspose3d equivalence would also need spatially
    # flipped kernels / transposed channel axes; we keep the forward-weight
    # orientation of the original dense reinterpretation.
    """
    B, D, H, W, Cin = x.shape
    Cout = w.shape[-1]
    wf = w * scale                                        # fold BN scale (f32)
    xq = jnp.pad(x.astype(jnp.bfloat16), ((0, 0), (0, 1), (0, 1), (0, 1), (0, 0)))
    # Shared patches over the 2x2x2 input neighbourhood, tap order (sd, sh, sw).
    taps = [xq[:, sd:sd + D, sh:sh + H, sw:sw + W, :]
            for sd in (0, 1) for sh in (0, 1) for sw in (0, 1)]
    xs = jnp.concatenate(taps, axis=-1).reshape(-1, 8 * Cin)   # (B*D*H*W, 8*Cin)

    def kidx(parity, s):          # kernel index feeding (output parity, input offset)
        if parity == 0:
            return 1 if s == 0 else None                  # even outputs: centre tap only
        return 0 if s == 0 else 2                         # odd outputs: taps 0 and 2

    zero_blk = jnp.zeros((Cin, Cout), wf.dtype)
    phase_w = []
    for pd in (0, 1):
        for ph in (0, 1):
            for pw_ in (0, 1):
                blocks = []
                for sd in (0, 1):
                    for sh in (0, 1):
                        for sw in (0, 1):
                            kd, kh, kw = kidx(pd, sd), kidx(ph, sh), kidx(pw_, sw)
                            blocks.append(zero_blk if None in (kd, kh, kw)
                                          else wf[kd, kh, kw])
                phase_w.append(jnp.concatenate(blocks, axis=0))    # (8*Cin, Cout)
    ws = jnp.stack(phase_w, axis=0)                                # (8, 8*Cin, Cout)

    y = fused_gemm(xs, ws, shift, act, mode="multi", out_dtype=out_dtype)  # (8, M, Cout)
    y = y.reshape(2, 2, 2, B, D, H, W, Cout).transpose(3, 4, 0, 5, 1, 6, 2, 7)
    return y.reshape(B, 2 * D, 2 * H, 2 * W, Cout)


def dispconv_readout(x, pdc, h_read, w_read):
    """Dispconv (3x3x3 conv, bias) + tanh + readout of the first h_read*w_read
    flattened voxels per batch.  Only the voxel slab feeding the readout window
    (plus a 1-voxel conv halo) is computed -- the rest of the disp volume is
    dead work for this forward pass.
    # TODO(synk): the reference reads the first h*w rows of a sparse tensor's
    # per-batch features (h, w = 192/2**i, 640/2**i on the KITTI grid); on this
    # dense synthetic grid we read the matching prefix of the flattened voxels.
    """
    B, D, H, W, _ = x.shape
    n_flat = h_read * w_read
    assert n_flat <= D * H * W
    rows_needed = -(-n_flat // W)                   # flattened (d, h) rows needed
    d_out = min(D, -(-rows_needed // H))
    h_out = H if d_out > 1 else rows_needed
    xs = x[:, :min(D, d_out + 1), :min(H, h_out + 1), :, :]   # +1 = conv halo
    st = conv3d_fused(xs, pdc["w"], pdc["scale"], pdc["shift"], act="tanh",
                      pool=False, out_dtype=jnp.bfloat16)
    st = st[:, :d_out, :h_out, :, :]
    feats = st.reshape(B, -1)[:, :n_flat]
    return feats.reshape(B, 1, h_read, w_read).astype(jnp.float32)


# ---------------------------------------------------------------------------
# Parameter init (synthetic, deterministic) and forward
# ---------------------------------------------------------------------------
def init_params(seed=42):
    key = jax.random.PRNGKey(seed)
    params = {}

    def split():
        nonlocal key
        key, sub = jax.random.split(key)
        return sub

    def conv_block(cin, cout, with_bn=True, with_bias=False):
        w = 0.1 * jax.random.normal(split(), (3, 3, 3, cin, cout), jnp.float32)
        if with_bn:
            gamma = 1.0 + 0.05 * jax.random.normal(split(), (cout,), jnp.float32)
            beta = 0.05 * jax.random.normal(split(), (cout,), jnp.float32)
            mean = 0.05 * jax.random.normal(split(), (cout,), jnp.float32)
            var = 1.0 + 0.1 * jax.random.uniform(split(), (cout,), jnp.float32)
            scale = gamma / jnp.sqrt(var + 1e-5)          # BN folded to scale/shift
            shift = beta - mean * scale
        elif with_bias:
            scale = jnp.ones((cout,), jnp.float32)
            shift = 0.05 * jax.random.normal(split(), (cout,), jnp.float32)
        else:
            scale = jnp.ones((cout,), jnp.float32)
            shift = jnp.zeros((cout,), jnp.float32)
        return {"w": w, "scale": scale, "shift": shift}

    # encoder: conv_i = Conv(bias=False) -> BN -> ReLU -> MaxPool(2,2)
    for i in range(5):
        cin = IN_CH if i == 0 else int(NUM_CH_DEC[i - 1])
        cout = int(NUM_CH_DEC[i])
        params[("conv", i)] = conv_block(cin, cout, with_bn=True)
    # decoder: upconv_i = ConvTranspose(k=3, s=2, bias=False) -> BN -> ReLU
    for i in range(4, -1, -1):
        cin = int(NUM_CH_DEC[i]) + (int(NUM_CH_DEC[i]) if i < 4 else 0)
        cout = IN_CH if i == 0 else int(NUM_CH_DEC[i - 1])
        params[("upconv", i)] = conv_block(cin, cout, with_bn=True)
    # dispconv (scales=[0]): Conv(bias=True), no BN / ReLU
    params[("dispconv", 0)] = conv_block(IN_CH, 1, with_bn=False, with_bias=True)
    return params


def refine_net_forward(x, params, scales=(0,), h_read=12, w_read=20):
    """x: (B, D, H, W, IN_CH) channels-last dense voxel grid."""
    features = []
    for i in range(5):
        p = params[("conv", i)]
        # Conv -> BN -> ReLU -> 2x2x2/2 max pool, all fused in one Pallas GEMM.
        x = conv3d_fused(x, p["w"], p["scale"], p["shift"], act="relu", pool=True)
        features.append(x)
    # cat_other=False path (input_features unused)
    p = params[("upconv", 4)]
    x = convtranspose3d_fused(x, p["w"], p["scale"], p["shift"], act="relu")
    offset = None
    for i in range(3, -1, -1):
        x = jnp.concatenate([x, features[i]], axis=-1)      # ME.cat == channel cat
        p = params[("upconv", i)]
        x = convtranspose3d_fused(x, p["w"], p["scale"], p["shift"], act="relu")
        if i in scales:
            pdc = params[("dispconv", i)]
            offset = dispconv_readout(x, pdc, h_read, w_read)
    return offset


if __name__ == "__main__":
    B, D, H, W = 2, 32, 32, 32          # 32 = minimum for 5 stride-2 pools
    x = jax.random.normal(jax.random.PRNGKey(0), (B, D, H, W, IN_CH), jnp.float32)
    params = init_params(seed=42)

    # Self-consistency: pallas fused GEMM+pool vs the same fused math in XLA.
    xs_p = jax.random.normal(jax.random.PRNGKey(1), (8, 512, 108), jnp.float32)
    w_p = 0.1 * jax.random.normal(jax.random.PRNGKey(2), (108, 4), jnp.float32)
    sh_p = jax.random.normal(jax.random.PRNGKey(3), (4,), jnp.float32)
    a = fused_gemm(xs_p, w_p, sh_p, "relu", mode="pool").astype(jnp.float32)
    b = fused_gemm(xs_p, w_p, sh_p, "relu", mode="pool",
                   min_rows=10**9).astype(jnp.float32)      # force the XLA path
    assert bool(jnp.allclose(a, b, atol=5e-2, rtol=5e-2)), "fused GEMM mismatch"

    fwd = jax.jit(refine_net_forward)
    offset = jax.block_until_ready(fwd(x, params))
    assert offset.shape == (B, 1, 12, 20), offset.shape
    assert bool(jnp.all(jnp.isfinite(offset)))
    assert bool(jnp.all(jnp.abs(offset) <= 1.0))            # tanh range
    print("KERNEL_OK")
</pallas_src>

<mosaic_0001>
module attributes {stable_mosaic.version = 11 : i64} {
  func.func @kernel(%arg0: i32, %arg1: memref<8x256x108xbf16, #tpu.memory_space<vmem>>, %arg2: memref<108x4xbf16, #tpu.memory_space<vmem>>, %arg3: memref<1x4xf32, #tpu.memory_space<vmem>>, %arg4: memref<256x4xbf16, #tpu.memory_space<vmem>>) attributes {dimension_semantics = [#tpu.dimension_semantics<parallel>], iteration_bounds = array<i64: 2>, scalar_prefetch = 0 : i64, scratch_operands = 0 : i64, tpu.core_type = #tpu.core_type<tc>, window_params = [{transform_indices = @transform_0, window_bounds = array<i64: 8, 256, 108>}, {pipeline_mode = #tpu.pipeline_mode<synchronous>, transform_indices = @transform_1, window_bounds = array<i64: 108, 4>}, {pipeline_mode = #tpu.pipeline_mode<synchronous>, transform_indices = @transform_2, window_bounds = array<i64: 1, 4>}, {transform_indices = @transform_3, window_bounds = array<i64: 256, 4>}]} {
    %c0 = arith.constant 0 : index
    %c0_0 = arith.constant 0 : index
    %0 = vector.load %arg2[%c0, %c0_0] : memref<108x4xbf16, #tpu.memory_space<vmem>>, vector<108x4xbf16>
    %c0_1 = arith.constant 0 : index
    %c0_2 = arith.constant 0 : index
    %c0_3 = arith.constant 0 : index
    %1 = vector.load %arg1[%c0_1, %c0_2, %c0_3] : memref<8x256x108xbf16, #tpu.memory_space<vmem>>, vector<1x256x108xbf16>
    %2 = vector.shape_cast %1 : vector<1x256x108xbf16> to vector<256x108xbf16>
    %cst = arith.constant dense<0.000000e+00> : vector<256x4xf32>
    %3 = tpu.matmul %2, %0, %cst {dimension_numbers = #tpu.dot_dimension_numbers<[1], [0], [0], [1], [0, 0, 1, 1], [], []>} : vector<256x108xbf16>, vector<108x4xbf16>, vector<256x4xf32> -> vector<256x4xf32>
    %c1 = arith.constant 1 : index
    %c0_4 = arith.constant 0 : index
    %c0_5 = arith.constant 0 : index
    %4 = vector.load %arg1[%c1, %c0_4, %c0_5] : memref<8x256x108xbf16, #tpu.memory_space<vmem>>, vector<1x256x108xbf16>
    %5 = vector.shape_cast %4 : vector<1x256x108xbf16> to vector<256x108xbf16>
    %cst_6 = arith.constant dense<0.000000e+00> : vector<256x4xf32>
    %6 = tpu.matmul %5, %0, %cst_6 {dimension_numbers = #tpu.dot_dimension_numbers<[1], [0], [0], [1], [0, 0, 1, 1], [], []>} : vector<256x108xbf16>, vector<108x4xbf16>, vector<256x4xf32> -> vector<256x4xf32>
    %7 = arith.maximumf %3, %6 : vector<256x4xf32>
    %c2 = arith.constant 2 : index
    %c0_7 = arith.constant 0 : index
    %c0_8 = arith.constant 0 : index
    %8 = vector.load %arg1[%c2, %c0_7, %c0_8] : memref<8x256x108xbf16, #tpu.memory_space<vmem>>, vector<1x256x108xbf16>
    %9 = vector.shape_cast %8 : vector<1x256x108xbf16> to vector<256x108xbf16>
    %cst_9 = arith.constant dense<0.000000e+00> : vector<256x4xf32>
    %10 = tpu.matmul %9, %0, %cst_9 {dimension_numbers = #tpu.dot_dimension_numbers<[1], [0], [0], [1], [0, 0, 1, 1], [], []>} : vector<256x108xbf16>, vector<108x4xbf16>, vector<256x4xf32> -> vector<256x4xf32>
    %11 = arith.maximumf %7, %10 : vector<256x4xf32>
    %c3 = arith.constant 3 : index
    %c0_10 = arith.constant 0 : index
    %c0_11 = arith.constant 0 : index
    %12 = vector.load %arg1[%c3, %c0_10, %c0_11] : memref<8x256x108xbf16, #tpu.memory_space<vmem>>, vector<1x256x108xbf16>
    %13 = vector.shape_cast %12 : vector<1x256x108xbf16> to vector<256x108xbf16>
    %cst_12 = arith.constant dense<0.000000e+00> : vector<256x4xf32>
    %14 = tpu.matmul %13, %0, %cst_12 {dimension_numbers = #tpu.dot_dimension_numbers<[1], [0], [0], [1], [0, 0, 1, 1], [], []>} : vector<256x108xbf16>, vector<108x4xbf16>, vector<256x4xf32> -> vector<256x4xf32>
    %15 = arith.maximumf %11, %14 : vector<256x4xf32>
    %c4 = arith.constant 4 : index
    %c0_13 = arith.constant 0 : index
    %c0_14 = arith.constant 0 : index
    %16 = vector.load %arg1[%c4, %c0_13, %c0_14] : memref<8x256x108xbf16, #tpu.memory_space<vmem>>, vector<1x256x108xbf16>
    %17 = vector.shape_cast %16 : vector<1x256x108xbf16> to vector<256x108xbf16>
    %cst_15 = arith.constant dense<0.000000e+00> : vector<256x4xf32>
    %18 = tpu.matmul %17, %0, %cst_15 {dimension_numbers = #tpu.dot_dimension_numbers<[1], [0], [0], [1], [0, 0, 1, 1], [], []>} : vector<256x108xbf16>, vector<108x4xbf16>, vector<256x4xf32> -> vector<256x4xf32>
    %19 = arith.maximumf %15, %18 : vector<256x4xf32>
    %c5 = arith.constant 5 : index
    %c0_16 = arith.constant 0 : index
    %c0_17 = arith.constant 0 : index
    %20 = vector.load %arg1[%c5, %c0_16, %c0_17] : memref<8x256x108xbf16, #tpu.memory_space<vmem>>, vector<1x256x108xbf16>
    %21 = vector.shape_cast %20 : vector<1x256x108xbf16> to vector<256x108xbf16>
    %cst_18 = arith.constant dense<0.000000e+00> : vector<256x4xf32>
    %22 = tpu.matmul %21, %0, %cst_18 {dimension_numbers = #tpu.dot_dimension_numbers<[1], [0], [0], [1], [0, 0, 1, 1], [], []>} : vector<256x108xbf16>, vector<108x4xbf16>, vector<256x4xf32> -> vector<256x4xf32>
    %23 = arith.maximumf %19, %22 : vector<256x4xf32>
    %c6 = arith.constant 6 : index
    %c0_19 = arith.constant 0 : index
    %c0_20 = arith.constant 0 : index
    %24 = vector.load %arg1[%c6, %c0_19, %c0_20] : memref<8x256x108xbf16, #tpu.memory_space<vmem>>, vector<1x256x108xbf16>
    %25 = vector.shape_cast %24 : vector<1x256x108xbf16> to vector<256x108xbf16>
    %cst_21 = arith.constant dense<0.000000e+00> : vector<256x4xf32>
    %26 = tpu.matmul %25, %0, %cst_21 {dimension_numbers = #tpu.dot_dimension_numbers<[1], [0], [0], [1], [0, 0, 1, 1], [], []>} : vector<256x108xbf16>, vector<108x4xbf16>, vector<256x4xf32> -> vector<256x4xf32>
    %27 = arith.maximumf %23, %26 : vector<256x4xf32>
    %c7 = arith.constant 7 : index
    %c0_22 = arith.constant 0 : index
    %c0_23 = arith.constant 0 : index
    %28 = vector.load %arg1[%c7, %c0_22, %c0_23] : memref<8x256x108xbf16, #tpu.memory_space<vmem>>, vector<1x256x108xbf16>
    %29 = vector.shape_cast %28 : vector<1x256x108xbf16> to vector<256x108xbf16>
    %cst_24 = arith.constant dense<0.000000e+00> : vector<256x4xf32>
    %30 = tpu.matmul %29, %0, %cst_24 {dimension_numbers = #tpu.dot_dimension_numbers<[1], [0], [0], [1], [0, 0, 1, 1], [], []>} : vector<256x108xbf16>, vector<108x4xbf16>, vector<256x4xf32> -> vector<256x4xf32>
    %31 = arith.maximumf %27, %30 : vector<256x4xf32>
    %c0_25 = arith.constant 0 : index
    %c0_26 = arith.constant 0 : index
    %32 = vector.load %arg3[%c0_25, %c0_26] : memref<1x4xf32, #tpu.memory_space<vmem>>, vector<1x4xf32>
    %33 = vector.broadcast %32 : vector<1x4xf32> to vector<256x4xf32>
    %34 = arith.addf %31, %33 : vector<256x4xf32>
    %cst_27 = arith.constant 0.000000e+00 : f32
    %35 = vector.broadcast %cst_27 : f32 to vector<256x4xf32>
    %36 = arith.maximumf %34, %35 : vector<256x4xf32>
    %37 = arith.truncf %36 : vector<256x4xf32> to vector<256x4xbf16>
    %c0_28 = arith.constant 0 : index
    %c0_29 = arith.constant 0 : index
    %38 = vector.load %arg4[%c0_28, %c0_29] : memref<256x4xbf16, #tpu.memory_space<vmem>>, vector<256x4xbf16>
    tpu.vector_store %arg4[%c0_28, %c0_29], %37 {strides = array<i32>} : memref<256x4xbf16, #tpu.memory_space<vmem>>, vector<256x4xbf16>,
    return
  }
  func.func @transform_0(%arg0: i32) -> (i32, i32, i32) {
    %c0_i32 = arith.constant 0 : i32
    %c0_i32_0 = arith.constant 0 : i32
    %c0_i32_1 = arith.constant 0 : i32
    return %c0_i32, %arg0, %c0_i32_0 : i32, i32, i32
  }
  func.func @transform_1(%arg0: i32) -> (i32, i32) {
    %c0_i32 = arith.constant 0 : i32
    %c0_i32_0 = arith.constant 0 : i32
    %c0_i32_1 = arith.constant 0 : i32
    return %c0_i32, %c0_i32_0 : i32, i32
  }
  func.func @transform_2(%arg0: i32) -> (i32, i32) {
    %c0_i32 = arith.constant 0 : i32
    %c0_i32_0 = arith.constant 0 : i32
    %c0_i32_1 = arith.constant 0 : i32
    return %c0_i32, %c0_i32_0 : i32, i32
  }
  func.func @transform_3(%arg0: i32) -> (i32, i32) {
    %c0_i32 = arith.constant 0 : i32
    %c0_i32_0 = arith.constant 0 : i32
    return %arg0, %c0_i32 : i32, i32
  }
}

</mosaic_0001>

<bundles_post_ra>
// kernel: tpu_custom_call.1
= control target key start
LH: loop header
LB: loop body
LE: loop exit
PB: predicated region body
PF: predicated region fallthrough
CT: control target
= control target key end

     0   :  { %s5718_s12 = smov 0   ;;  %s5720_s13 = smov 0   ;;  %s7414_s0 = inlined_call_operand.vmem [shape: bf16[8,512,108], index: 0, kind: input, shape index: {}]   ;;  %s7415_s1 = inlined_call_operand.vmem [shape: bf16[108,4], index: 1, kind: input, shape index: {}]   ;;  %s7416_s2 = inlined_call_operand.vmem [shape: f32[1,4], index: 2, kind: input, shape index: {}]   ;;  %s7417_s3 = inlined_call_operand.vmem [shape: bf16[512,4], index: 3, kind: output, shape index: {}]  }
   0x1   :  { %s5722_s14 = smov 0  }
   0x2 LB: > { %s4389_s15 = sadd.s32 4294967295, %s5696_s14   ;;  %s5735_s16 = sadd.s32 1, %s5696_s14   ;;  %s5696_s14 = sphi %s5722_s14, %s7639_s14   ;;  %s5692_s13 = sphi %s5720_s13, %s7638_s13   ;;  %s5688_s12 = sphi %s5718_s12, %s7637_s12  }
   0x3   : > { %s17_s17 = ssub.s32 %s5696_s14, %s5735_s16  ;;  %s20_s18 = sadd.s32 1, %s5692_s13 }
   0x4   : > { %p18_p0 = scmp.eq.s32.totalorder %s17_s17, 0  ;;  %p27_p1 = scmp.ne.s32.totalorder %s5692_s13, %s5688_s12 }
   0x5   : > { %p28_p2 = scmp.eq.s32.totalorder %s5696_s14, 0  ;;  %p4392_p4 = scmp.ge.s32.totalorder %s5696_s14, 2 }
   0x6   : > { %s5744_s19 = scalar_select %p18_p0, %s5692_s13, %s20_s18  }
   0x7   : > { %p29_p3 = por %p28_p2, %p27_p1  ;;  %127 = sbr.rel (%p4392_p4) target bundleno = 82 (0x52), region = 24 }
   0xe   : > { %130 = sbr.rel (!%p29_p3) target bundleno = 82 (0x52), region = 28  ;;  %s132_s20 = sand.u32 (%p29_p3), 1, %s5692_s13  }
   0xf   : > { %s4922_s21 = sshll.u32 (%p29_p3), %s5696_s14, 7  ;;  %s4393_s22 = sshll.u32 (%p29_p3), %s132_s20, 10 }
  0x10   : > { %s5752_s25 = scalar_lea.vmem (%p29_p3), %s7414_s0, %s4922_s21  ;;  %s5757_s26 = scalar_lea.vmem (%p29_p3), [#allocation2], %s4393_s22 }
  0x11   : > { %v153_v0 = vld [vmem:[%s5752_s25] sm:$0xff] (%p29_p3)   ;;  %v157_v1 = vld [vmem:[%s5752_s25 + $0x8] sm:$0xff] (%p29_p3)   ;;  %v161_v2 = vld [vmem:[%s5752_s25 + $0x10] sm:$0xff] (%p29_p3)  }
  0x12   : > { %154 = vst [vmem:[%s5757_s26] sm:$0xff] (%p29_p3), %v153_v0   ;;  %158 = vst [vmem:[%s5757_s26 + $0x8] sm:$0xff] (%p29_p3), %v157_v1   ;;  %v165_v3 = vld [vmem:[%s5752_s25 + $0x18] sm:$0xff] (%p29_p3)   ;;  %v169_v4 = vld [vmem:[%s5752_s25 + $0x20] sm:$0xff] (%p29_p3)  }
  0x13   : > { %162 = vst [vmem:[%s5757_s26 + $0x10] sm:$0xff] (%p29_p3), %v161_v2   ;;  %v173_v5 = vld [vmem:[%s5752_s25 + $0x28] sm:$0xff] (%p29_p3)   ;;  %166 = vst [vmem:[%s5757_s26 + $0x18] sm:$0xff] (%p29_p3), %v165_v3   ;;  %v177_v6 = vld [vmem:[%s5752_s25 + $0x30] sm:$0xff] (%p29_p3)  }
  0x14   : > { %170 = vst [vmem:[%s5757_s26 + $0x20] sm:$0xff] (%p29_p3), %v169_v4   ;;  %174 = vst [vmem:[%s5757_s26 + $0x28] sm:$0xff] (%p29_p3), %v173_v5   ;;  %v181_v7 = vld [vmem:[%s5752_s25 + $0x38] sm:$0xff] (%p29_p3)   ;;  %v185_v8 = vld [vmem:[%s5752_s25 + $0x40] sm:$0xff] (%p29_p3)  }
  0x15   : > { %178 = vst [vmem:[%s5757_s26 + $0x30] sm:$0xff] %v177_v6   ;;  %182 = vst [vmem:[%s5757_s26 + $0x38] sm:$0xff] %v181_v7   ;;  %v189_v9 = vld [vmem:[%s5752_s25 + $0x48] sm:$0xff]   ;;  %v193_v10 = vld [vmem:[%s5752_s25 + $0x50] sm:$0xff]  }
  0x16   : > { %186 = vst [vmem:[%s5757_s26 + $0x40] sm:$0xff] %v185_v8   ;;  %v197_v11 = vld [vmem:[%s5752_s25 + $0x58] sm:$0xff]   ;;  %190 = vst [vmem:[%s5757_s26 + $0x48] sm:$0xff] %v189_v9   ;;  %v201_v12 = vld [vmem:[%s5752_s25 + $0x60] sm:$0xff]  }
  0x17   : > { %194 = vst [vmem:[%s5757_s26 + $0x50] sm:$0xff] %v193_v10   ;;  %198 = vst [vmem:[%s5757_s26 + $0x58] sm:$0xff] %v197_v11   ;;  %v205_v13 = vld [vmem:[%s5752_s25 + $0x68] sm:$0xff]   ;;  %v209_v14 = vld [vmem:[%s5752_s25 + $0x70] sm:$0xff]  }
  0x18   : > { %202 = vst [vmem:[%s5757_s26 + $0x60] sm:$0xff] %v201_v12   ;;  %206 = vst [vmem:[%s5757_s26 + $0x68] sm:$0xff] %v205_v13   ;;  %v213_v15 = vld [vmem:[%s5752_s25 + $0x78] sm:$0xff]   ;;  %v217_v16 = vld [vmem:[%s5752_s25 + $0x100] sm:$0xff]  }
  0x19   : > { %210 = vst [vmem:[%s5757_s26 + $0x70] sm:$0xff] %v209_v14   ;;  %v221_v17 = vld [vmem:[%s5752_s25 + $0x108] sm:$0xff]   ;;  %214 = vst [vmem:[%s5757_s26 + $0x78] sm:$0xff] %v213_v15   ;;  %v225_v18 = vld [vmem:[%s5752_s25 + $0x110] sm:$0xff]  }
  0x1a   : > { %218 = vst [vmem:[%s5757_s26 + $0x80] sm:$0xff] %v217_v16   ;;  %222 = vst [vmem:[%s5757_s26 + $0x88] sm:$0xff] %v221_v17   ;;  %v229_v19 = vld [vmem:[%s5752_s25 + $0x118] sm:$0xff]   ;;  %v233_v20 = vld [vmem:[%s5752_s25 + $0x120] sm:$0xff]  }
  0x1b   : > { %226 = vst [vmem:[%s5757_s26 + $0x90] sm:$0xff] %v225_v18   ;;  %230 = vst [vmem:[%s5757_s26 + $0x98] sm:$0xff] %v229_v19   ;;  %v237_v21 = vld [vmem:[%s5752_s25 + $0x128] sm:$0xff]   ;;  %v241_v22 = vld [vmem:[%s5752_s25 + $0x130] sm:$0xff]  }
  0x1c   : > { %234 = vst [vmem:[%s5757_s26 + $0xa0] sm:$0xff] %v233_v20   ;;  %v245_v23 = vld [vmem:[%s5752_s25 + $0x138] sm:$0xff]   ;;  %238 = vst [vmem:[%s5757_s26 + $0xa8] sm:$0xff] %v237_v21   ;;  %v249_v24 = vld [vmem:[%s5752_s25 + $0x140] sm:$0xff]  }
  0x1d   : > { %242 = vst [vmem:[%s5757_s26 + $0xb0] sm:$0xff] %v241_v22   ;;  %246 = vst [vmem:[%s5757_s26 + $0xb8] sm:$0xff] %v245_v23   ;;  %v253_v25 = vld [vmem:[%s5752_s25 + $0x148] sm:$0xff]   ;;  %v257_v26 = vld [vmem:[%s5752_s25 + $0x150] sm:$0xff]  }
  0x1e   : > { %250 = vst [vmem:[%s5757_s26 + $0xc0] sm:$0xff] %v249_v24   ;;  %254 = vst [vmem:[%s5757_s26 + $0xc8] sm:$0xff] %v253_v25   ;;  %v261_v27 = vld [vmem:[%s5752_s25 + $0x158] sm:$0xff]   ;;  %v265_v28 = vld [vmem:[%s5752_s25 + $0x160] sm:$0xff]  }
  0x1f   : > { %258 = vst [vmem:[%s5757_s26 + $0xd0] sm:$0xff] %v257_v26   ;;  %v269_v29 = vld [vmem:[%s5752_s25 + $0x168] sm:$0xff]   ;;  %262 = vst [vmem:[%s5757_s26 + $0xd8] sm:$0xff] %v261_v27   ;;  %v273_v30 = vld [vmem:[%s5752_s25 + $0x170] sm:$0xff]  }
  0x20   : > { %266 = vst [vmem:[%s5757_s26 + $0xe0] sm:$0xff] %v265_v28   ;;  %270 = vst [vmem:[%s5757_s26 + $0xe8] sm:$0xff] %v269_v29   ;;  %v277_v31 = vld [vmem:[%s5752_s25 + $0x178] sm:$0xff]   ;;  %v281_v32 = vld [vmem:[%s5752_s25 + $0x200] sm:$0xff]  }
  0x21   : > { %274 = vst [vmem:[%s5757_s26 + $0xf0] sm:$0xff] %v273_v30   ;;  %278 = vst [vmem:[%s5757_s26 + $0xf8] sm:$0xff] %v277_v31   ;;  %v285_v33 = vld [vmem:[%s5752_s25 + $0x208] sm:$0xff]   ;;  %v289_v34 = vld [vmem:[%s5752_s25 + $0x210] sm:$0xff]  }
  0x22   : > { %282 = vst [vmem:[%s5757_s26 + $0x100] sm:$0xff] %v281_v32   ;;  %v293_v35 = vld [vmem:[%s5752_s25 + $0x218] sm:$0xff]   ;;  %286 = vst [vmem:[%s5757_s26 + $0x108] sm:$0xff] %v285_v33   ;;  %v297_v36 = vld [vmem:[%s5752_s25 + $0x220] sm:$0xff]  }
  0x23   : > { %290 = vst [vmem:[%s5757_s26 + $0x110] sm:$0xff] %v289_v34   ;;  %294 = vst [vmem:[%s5757_s26 + $0x118] sm:$0xff] %v293_v35   ;;  %v301_v37 = vld [vmem:[%s5752_s25 + $0x228] sm:$0xff]   ;;  %v305_v38 = vld [vmem:[%s5752_s25 + $0x230] sm:$0xff]  }
  0x24   : > { %298 = vst [vmem:[%s5757_s26 + $0x120] sm:$0xff] %v297_v36   ;;  %302 = vst [vmem:[%s5757_s26 + $0x128] sm:$0xff] %v301_v37   ;;  %v309_v39 = vld [vmem:[%s5752_s25 + $0x238] sm:$0xff]   ;;  %v313_v40 = vld [vmem:[%s5752_s25 + $0x240] sm:$0xff]  }
  0x25   : > { %306 = vst [vmem:[%s5757_s26 + $0x130] sm:$0xff] %v305_v38   ;;  %v317_v41 = vld [vmem:[%s5752_s25 + $0x248] sm:$0xff]   ;;  %310 = vst [vmem:[%s5757_s26 + $0x138] sm:$0xff] %v309_v39   ;;  %v321_v42 = vld [vmem:[%s5752_s25 + $0x250] sm:$0xff]  }
  0x26   : > { %314 = vst [vmem:[%s5757_s26 + $0x140] sm:$0xff] %v313_v40   ;;  %318 = vst [vmem:[%s5757_s26 + $0x148] sm:$0xff] %v317_v41   ;;  %v325_v43 = vld [vmem:[%s5752_s25 + $0x258] sm:$0xff]   ;;  %v329_v44 = vld [vmem:[%s5752_s25 + $0x260] sm:$0xff]  }
  0x27   : > { %322 = vst [vmem:[%s5757_s26 + $0x150] sm:$0xff] %v321_v42   ;;  %326 = vst [vmem:[%s5757_s26 + $0x158] sm:$0xff] %v325_v43   ;;  %v333_v45 = vld [vmem:[%s5752_s25 + $0x268] sm:$0xff]   ;;  %v337_v46 = vld [vmem:[%s5752_s25 + $0x270] sm:$0xff]  }
  0x28   : > { %330 = vst [vmem:[%s5757_s26 + $0x160] sm:$0xff] %v329_v44   ;;  %v341_v47 = vld [vmem:[%s5752_s25 + $0x278] sm:$0xff]   ;;  %334 = vst [vmem:[%s5757_s26 + $0x168] sm:$0xff] %v333_v45   ;;  %v345_v48 = vld [vmem:[%s5752_s25 + $0x300] sm:$0xff]  }
  0x29   : > { %338 = vst [vmem:[%s5757_s26 + $0x170] sm:$0xff] %v337_v46   ;;  %342 = vst [vmem:[%s5757_s26 + $0x178] sm:$0xff] %v341_v47   ;;  %v349_v49 = vld [vmem:[%s5752_s25 + $0x308] sm:$0xff]   ;;  %v353_v50 = vld [vmem:[%s5752_s25 + $0x310] sm:$0xff]  }
  0x2a   : > { %346 = vst [vmem:[%s5757_s26 + $0x180] sm:$0xff] %v345_v48   ;;  %350 = vst [vmem:[%s5757_s26 + $0x188] sm:$0xff] %v349_v49   ;;  %v357_v51 = vld [vmem:[%s5752_s25 + $0x318] sm:$0xff]   ;;  %v361_v52 = vld [vmem:[%s5752_s25 + $0x320] sm:$0xff]  }
  0x2b   : > { %354 = vst [vmem:[%s5757_s26 + $0x190] sm:$0xff] %v353_v50   ;;  %v365_v53 = vld [vmem:[%s5752_s25 + $0x328] sm:$0xff]   ;;  %358 = vst [vmem:[%s5757_s26 + $0x198] sm:$0xff] %v357_v51   ;;  %v369_v54 = vld [vmem:[%s5752_s25 + $0x330] sm:$0xff]  }
  0x2c   : > { %362 = vst [vmem:[%s5757_s26 + $0x1a0] sm:$0xff] %v361_v52   ;;  %366 = vst [vmem:[%s5757_s26 + $0x1a8] sm:$0xff] %v365_v53   ;;  %v373_v55 = vld [vmem:[%s5752_s25 + $0x338] sm:$0xff]   ;;  %v377_v56 = vld [vmem:[%s5752_s25 + $0x340] sm:$0xff]  }
  0x2d   : > { %370 = vst [vmem:[%s5757_s26 + $0x1b0] sm:$0xff] %v369_v54   ;;  %374 = vst [vmem:[%s5757_s26 + $0x1b8] sm:$0xff] %v373_v55   ;;  %v381_v57 = vld [vmem:[%s5752_s25 + $0x348] sm:$0xff]   ;;  %v385_v58 = vld [vmem:[%s5752_s25 + $0x350] sm:$0xff]  }
  0x2e   : > { %378 = vst [vmem:[%s5757_s26 + $0x1c0] sm:$0xff] %v377_v56   ;;  %v389_v59 = vld [vmem:[%s5752_s25 + $0x358] sm:$0xff]   ;;  %382 = vst [vmem:[%s5757_s26 + $0x1c8] sm:$0xff] %v381_v57   ;;  %v393_v60 = vld [vmem:[%s5752_s25 + $0x360] sm:$0xff]  }
  0x2f   : > { %386 = vst [vmem:[%s5757_s26 + $0x1d0] sm:$0xff] %v385_v58   ;;  %390 = vst [vmem:[%s5757_s26 + $0x1d8] sm:$0xff] %v389_v59   ;;  %v397_v61 = vld [vmem:[%s5752_s25 + $0x368] sm:$0xff]   ;;  %v401_v62 = vld [vmem:[%s5752_s25 + $0x370] sm:$0xff]  }
  0x30   : > { %394 = vst [vmem:[%s5757_s26 + $0x1e0] sm:$0xff] %v393_v60   ;;  %398 = vst [vmem:[%s5757_s26 + $0x1e8] sm:$0xff] %v397_v61   ;;  %v405_v63 = vld [vmem:[%s5752_s25 + $0x378] sm:$0xff]   ;;  %v409_v0 = vld [vmem:[%s5752_s25 + $0x400] sm:$0xff]  }
  0x31   : > { %402 = vst [vmem:[%s5757_s26 + $0x1f0] sm:$0xff] %v401_v62   ;;  %v413_v1 = vld [vmem:[%s5752_s25 + $0x408] sm:$0xff]   ;;  %406 = vst [vmem:[%s5757_s26 + $0x1f8] sm:$0xff] %v405_v63   ;;  %v417_v2 = vld [vmem:[%s5752_s25 + $0x410] sm:$0xff]  }
  0x32   : > { %410 = vst [vmem:[%s5757_s26 + $0x200] sm:$0xff] %v409_v0   ;;  %414 = vst [vmem:[%s5757_s26 + $0x208] sm:$0xff] %v413_v1   ;;  %v421_v3 = vld [vmem:[%s5752_s25 + $0x418] sm:$0xff]   ;;  %v425_v4 = vld [vmem:[%s5752_s25 + $0x420] sm:$0xff]  }
  0x33   : > { %418 = vst [vmem:[%s5757_s26 + $0x210] sm:$0xff] %v417_v2   ;;  %422 = vst [vmem:[%s5757_s26 + $0x218] sm:$0xff] %v421_v3   ;;  %v429_v5 = vld [vmem:[%s5752_s25 + $0x428] sm:$0xff]   ;;  %v433_v6 = vld [vmem:[%s5752_s25 + $0x430] sm:$0xff]  }
  0x34   : > { %426 = vst [vmem:[%s5757_s26 + $0x220] sm:$0xff] %v425_v4   ;;  %v437_v7 = vld [vmem:[%s5752_s25 + $0x438] sm:$0xff]   ;;  %430 = vst [vmem:[%s5757_s26 + $0x228] sm:$0xff] %v429_v5   ;;  %v441_v8 = vld [vmem:[%s5752_s25 + $0x440] sm:$0xff]  }
  0x35   : > { %434 = vst [vmem:[%s5757_s26 + $0x230] sm:$0xff] %v433_v6   ;;  %438 = vst [vmem:[%s5757_s26 + $0x238] sm:$0xff] %v437_v7   ;;  %v445_v9 = vld [vmem:[%s5752_s25 + $0x448] sm:$0xff]   ;;  %v449_v10 = vld [vmem:[%s5752_s25 + $0x450] sm:$0xff]  }
  0x36   : > { %442 = vst [vmem:[%s5757_s26 + $0x240] sm:$0xff] %v441_v8   ;;  %446 = vst [vmem:[%s5757_s26 + $0x248] sm:$0xff] %v445_v9   ;;  %v453_v11 = vld [vmem:[%s5752_s25 + $0x458] sm:$0xff]   ;;  %v457_v12 = vld [vmem:[%s5752_s25 + $0x460] sm:$0xff]  }
  0x37   : > { %450 = vst [vmem:[%s5757_s26 + $0x250] sm:$0xff] %v449_v10   ;;  %v461_v13 = vld [vmem:[%s5752_s25 + $0x468] sm:$0xff]   ;;  %454 = vst [vmem:[%s5757_s26 + $0x258] sm:$0xff] %v453_v11   ;;  %v465_v14 = vld [vmem:[%s5752_s25 + $0x470] sm:$0xff]  }
  0x38   : > { %458 = vst [vmem:[%s5757_s26 + $0x260] sm:$0xff] %v457_v12   ;;  %462 = vst [vmem:[%s5757_s26 + $0x268] sm:$0xff] %v461_v13   ;;  %v469_v15 = vld [vmem:[%s5752_s25 + $0x478] sm:$0xff]   ;;  %v473_v16 = vld [vmem:[%s5752_s25 + $0x500] sm:$0xff]  }
  0x39   : > { %466 = vst [vmem:[%s5757_s26 + $0x270] sm:$0xff] %v465_v14   ;;  %470 = vst [vmem:[%s5757_s26 + $0x278] sm:$0xff] %v469_v15   ;;  %v477_v17 = vld [vmem:[%s5752_s25 + $0x508] sm:$0xff]   ;;  %v481_v18 = vld [vmem:[%s5752_s25 + $0x510] sm:$0xff]  }
  0x3a   : > { %474 = vst [vmem:[%s5757_s26 + $0x280] sm:$0xff] %v473_v16   ;;  %v485_v19 = vld [vmem:[%s5752_s25 + $0x518] sm:$0xff]   ;;  %478 = vst [vmem:[%s5757_s26 + $0x288] sm:$0xff] %v477_v17   ;;  %v489_v20 = vld [vmem:[%s5752_s25 + $0x520] sm:$0xff]  }
  0x3b   : > { %482 = vst [vmem:[%s5757_s26 + $0x290] sm:$0xff] %v481_v18   ;;  %486 = vst [vmem:[%s5757_s26 + $0x298] sm:$0xff] %v485_v19   ;;  %v493_v21 = vld [vmem:[%s5752_s25 + $0x528] sm:$0xff]   ;;  %v497_v22 = vld [vmem:[%s5752_s25 + $0x530] sm:$0xff]  }
  0x3c   : > { %490 = vst [vmem:[%s5757_s26 + $0x2a0] sm:$0xff] %v489_v20   ;;  %494 = vst [vmem:[%s5757_s26 + $0x2a8] sm:$0xff] %v493_v21   ;;  %v501_v23 = vld [vmem:[%s5752_s25 + $0x538] sm:$0xff]   ;;  %v505_v24 = vld [vmem:[%s5752_s25 + $0x540] sm:$0xff]  }
  0x3d   : > { %498 = vst [vmem:[%s5757_s26 + $0x2b0] sm:$0xff] %v497_v22   ;;  %v509_v25 = vld [vmem:[%s5752_s25 + $0x548] sm:$0xff]   ;;  %502 = vst [vmem:[%s5757_s26 + $0x2b8] sm:$0xff] %v501_v23   ;;  %v513_v26 = vld [vmem:[%s5752_s25 + $0x550] sm:$0xff]  }
  0x3e   : > { %506 = vst [vmem:[%s5757_s26 + $0x2c0] sm:$0xff] %v505_v24   ;;  %510 = vst [vmem:[%s5757_s26 + $0x2c8] sm:$0xff] %v509_v25   ;;  %v517_v27 = vld [vmem:[%s5752_s25 + $0x558] sm:$0xff]   ;;  %v521_v28 = vld [vmem:[%s5752_s25 + $0x560] sm:$0xff]  }
  0x3f   : > { %514 = vst [vmem:[%s5757_s26 + $0x2d0] sm:$0xff] %v513_v26   ;;  %518 = vst [vmem:[%s5757_s26 + $0x2d8] sm:$0xff] %v517_v27   ;;  %v525_v29 = vld [vmem:[%s5752_s25 + $0x568] sm:$0xff]   ;;  %v529_v30 = vld [vmem:[%s5752_s25 + $0x570] sm:$0xff]  }
  0x40   : > { %522 = vst [vmem:[%s5757_s26 + $0x2e0] sm:$0xff] %v521_v28   ;;  %v533_v31 = vld [vmem:[%s5752_s25 + $0x578] sm:$0xff]   ;;  %526 = vst [vmem:[%s5757_s26 + $0x2e8] sm:$0xff] %v525_v29   ;;  %v537_v32 = vld [vmem:[%s5752_s25 + $0x600] sm:$0xff]  }
  0x41   : > { %530 = vst [vmem:[%s5757_s26 + $0x2f0] sm:$0xff] %v529_v30   ;;  %534 = vst [vmem:[%s5757_s26 + $0x2f8] sm:$0xff] %v533_v31   ;;  %v541_v33 = vld [vmem:[%s5752_s25 + $0x608] sm:$0xff]   ;;  %v545_v34 = vld [vmem:[%s5752_s25 + $0x610] sm:$0xff]  }
  0x42   : > { %538 = vst [vmem:[%s5757_s26 + $0x300] sm:$0xff] %v537_v32   ;;  %542 = vst [vmem:[%s5757_s26 + $0x308] sm:$0xff] %v541_v33   ;;  %v549_v35 = vld [vmem:[%s5752_s25 + $0x618] sm:$0xff]   ;;  %v553_v36 = vld [vmem:[%s5752_s25 + $0x620] sm:$0xff]  }
  0x43   : > { %546 = vst [vmem:[%s5757_s26 + $0x310] sm:$0xff] %v545_v34   ;;  %v557_v37 = vld [vmem:[%s5752_s25 + $0x628] sm:$0xff]   ;;  %550 = vst [vmem:[%s5757_s26 + $0x318] sm:$0xff] %v549_v35   ;;  %v561_v38 = vld [vmem:[%s5752_s25 + $0x630] sm:$0xff]  }
  0x44   : > { %554 = vst [vmem:[%s5757_s26 + $0x320] sm:$0xff] %v553_v36   ;;  %558 = vst [vmem:[%s5757_s26 + $0x328] sm:$0xff] %v557_v37   ;;  %v565_v39 = vld [vmem:[%s5752_s25 + $0x638] sm:$0xff]   ;;  %v569_v40 = vld [vmem:[%s5752_s25 + $0x640] sm:$0xff]  }
  0x45   : > { %562 = vst [vmem:[%s5757_s26 + $0x330] sm:$0xff] %v561_v38   ;;  %566 = vst [vmem:[%s5757_s26 + $0x338] sm:$0xff] %v565_v39   ;;  %v573_v41 = vld [vmem:[%s5752_s25 + $0x648] sm:$0xff]   ;;  %v577_v42 = vld [vmem:[%s5752_s25 + $0x650] sm:$0xff]  }
  0x46   : > { %570 = vst [vmem:[%s5757_s26 + $0x340] sm:$0xff] %v569_v40   ;;  %v581_v43 = vld [vmem:[%s5752_s25 + $0x658] sm:$0xff]   ;;  %574 = vst [vmem:[%s5757_s26 + $0x348] sm:$0xff] %v573_v41   ;;  %v585_v44 = vld [vmem:[%s5752_s25 + $0x660] sm:$0xff]  }
  0x47   : > { %578 = vst [vmem:[%s5757_s26 + $0x350] sm:$0xff] %v577_v42   ;;  %582 = vst [vmem:[%s5757_s26 + $0x358] sm:$0xff] %v581_v43   ;;  %v589_v45 = vld [vmem:[%s5752_s25 + $0x668] sm:$0xff]   ;;  %v593_v46 = vld [vmem:[%s5752_s25 + $0x670] sm:$0xff]  }
  0x48   : > { %586 = vst [vmem:[%s5757_s26 + $0x360] sm:$0xff] %v585_v44   ;;  %590 = vst [vmem:[%s5757_s26 + $0x368] sm:$0xff] %v589_v45   ;;  %v597_v47 = vld [vmem:[%s5752_s25 + $0x678] sm:$0xff]   ;;  %v601_v48 = vld [vmem:[%s5752_s25 + $0x700] sm:$0xff]  }
  0x49   : > { %594 = vst [vmem:[%s5757_s26 + $0x370] sm:$0xff] %v593_v46   ;;  %v605_v49 = vld [vmem:[%s5752_s25 + $0x708] sm:$0xff]   ;;  %598 = vst [vmem:[%s5757_s26 + $0x378] sm:$0xff] %v597_v47   ;;  %v609_v50 = vld [vmem:[%s5752_s25 + $0x710] sm:$0xff]  }
  0x4a   : > { %602 = vst [vmem:[%s5757_s26 + $0x380] sm:$0xff] %v601_v48   ;;  %606 = vst [vmem:[%s5757_s26 + $0x388] sm:$0xff] %v605_v49   ;;  %v613_v51 = vld [vmem:[%s5752_s25 + $0x718] sm:$0xff]   ;;  %v617_v52 = vld [vmem:[%s5752_s25 + $0x720] sm:$0xff]  }
  0x4b   : > { %610 = vst [vmem:[%s5757_s26 + $0x390] sm:$0xff] %v609_v50   ;;  %614 = vst [vmem:[%s5757_s26 + $0x398] sm:$0xff] %v613_v51   ;;  %v621_v53 = vld [vmem:[%s5752_s25 + $0x728] sm:$0xff]   ;;  %v625_v54 = vld [vmem:[%s5752_s25 + $0x730] sm:$0xff]  }
  0x4c   : > { %618 = vst [vmem:[%s5757_s26 + $0x3a0] sm:$0xff] %v617_v52   ;;  %v629_v55 = vld [vmem:[%s5752_s25 + $0x738] sm:$0xff]   ;;  %622 = vst [vmem:[%s5757_s26 + $0x3a8] sm:$0xff] %v621_v53   ;;  %v633_v56 = vld [vmem:[%s5752_s25 + $0x740] sm:$0xff]  }
  0x4d   : > { %626 = vst [vmem:[%s5757_s26 + $0x3b0] sm:$0xff] %v625_v54   ;;  %630 = vst [vmem:[%s5757_s26 + $0x3b8] sm:$0xff] %v629_v55   ;;  %v637_v57 = vld [vmem:[%s5752_s25 + $0x748] sm:$0xff]   ;;  %v641_v58 = vld [vmem:[%s5752_s25 + $0x750] sm:$0xff]  }
  0x4e   : > { %634 = vst [vmem:[%s5757_s26 + $0x3c0] sm:$0xff] %v633_v56   ;;  %638 = vst [vmem:[%s5757_s26 + $0x3c8] sm:$0xff] %v637_v57   ;;  %v645_v59 = vld [vmem:[%s5752_s25 + $0x758] sm:$0xff]   ;;  %v649_v60 = vld [vmem:[%s5752_s25 + $0x760] sm:$0xff]  }
  0x4f   : > { %642 = vst [vmem:[%s5757_s26 + $0x3d0] sm:$0xff] %v641_v58   ;;  %v653_v61 = vld [vmem:[%s5752_s25 + $0x768] sm:$0xff]   ;;  %646 = vst [vmem:[%s5757_s26 + $0x3d8] sm:$0xff] %v645_v59   ;;  %v657_v62 = vld [vmem:[%s5752_s25 + $0x770] sm:$0xff]  }
  0x50   : > { %650 = vst [vmem:[%s5757_s26 + $0x3e0] sm:$0xff] %v649_v60   ;;  %654 = vst [vmem:[%s5757_s26 + $0x3e8] sm:$0xff] %v653_v61   ;;  %v661_v63 = vld [vmem:[%s5752_s25 + $0x778] sm:$0xff]  }
  0x51   : > { %658 = vst [vmem:[%s5757_s26 + $0x3f0] sm:$0xff] %v657_v62   ;;  %662 = vst [vmem:[%s5757_s26 + $0x3f8] sm:$0xff] %v661_v63  }
  0x52 PF: > { %p4396_p5 = scmp.ge.s32.totalorder %s5696_s14, 1  ;;  %p1198_p6 = scmp.lt.s32.totalorder %s5696_s14, 3 }
  0x54   : > { %p1199_p7 = pnand %p4396_p5, %p1198_p6 }
  0x56   : > { %1202 = sbr.rel (%p1199_p7) target bundleno = 596 (0x254), region = 69 }
  0x5d   : > { %v6017_v0 = vld [vmem:[%s7415_s1] sm:$0xff]   ;;  %v6022_v1 = vld [vmem:[%s7415_s1 + $0x8] sm:$0xff]   ;;  %s1205_s4 = sand.u32 1, %s5688_s12   ;;  %v6034_v2 = vld [vmem:[%s7415_s1 + $0x10] sm:$0xff]   ;;  %vm1403_vm0 = vcmask 883712   ;;  %vm1452_vm1 = vcmask 1045504  }
  0x5e   : > { %5139 = vmatprep.subr.bf16.mxu0 %v6017_v0  ;;  %5185 = vmatprep.subr.bf16.mxu1 %v6017_v0  ;;  %s4397_s5 = sshll.u32 %s1205_s4, 10  ;;  %v6039_v3 = vld [vmem:[%s7415_s1 + $0x18] sm:$0xff]   ;;  %v6058_v6 = vld [vmem:[%s7415_s1 + $0x20] sm:$0xff]   ;;  %v6067_v7 = vld [vmem:[%s7415_s1 + $0x28] sm:$0xff]   ;;  %s4398_s22 = sshll.u32 %s4389_s15, 5  ;;  %vm4294_vm2 = vcmask 27648  }
  0x5f   : > { %5140 = vmatpush3.bf16.msra.mxu0 %v6017_v0  ;;  %5186 = vmatpush3.bf16.msra.mxu1 %v6017_v0  ;;  %s6043_s10 = scalar_lea.vmem [#allocation2], %s4397_s5  ;;  %v6076_v8 = vld [vmem:[%s7415_s1 + $0x30] sm:$0x3f]   ;;  %p1230_p8 = scmp.lt.s32.totalorder %s4398_s22, 63 }
  0x60   : > { %5141 = vmatprep.subr.bf16.mxu0 %v6022_v1  ;;  %5187 = vmatprep.subr.bf16.mxu1 %v6022_v1  ;;  %v5546_v4 = vld [vmem:[%s6043_s10] sm:$0xff]   ;;  %v6086_v9 = vsel %vm1452_vm1, %v6076_v8, 0  ;;  %v5548_v10 = vld [vmem:[%s6043_s10 + $0x8] sm:$0xff]   ;;  %v5550_v12 = vld [vmem:[%s6043_s10 + $0x10] sm:$0xff]  }
  0x61   : > { %v5547_v5 = vld [vmem:[%s6043_s10 + $0x80] sm:$0xff]   ;;  %5153 = vmatprep.mubr.msk.bf16.mxu0 %vm1403_vm0, %v5546_v4  ;;  %v5549_v11 = vld [vmem:[%s6043_s10 + $0x88] sm:$0xff]   ;;  %v5551_v13 = vld [vmem:[%s6043_s10 + $0x90] sm:$0xff]   ;;  %s7641_s22 = smov (!%p1230_p8, %s4398_s22), 63 }
  0x62   : > { %5199 = vmatprep.mubr.msk.bf16.mxu1 %vm1403_vm0, %v5547_v5  ;;  %v5552_v14 = vld [vmem:[%s6043_s10 + $0x18] sm:$0xff]   ;;  %v5554_v16 = vld [vmem:[%s6043_s10 + $0x20] sm:$0xff]   ;;  %v5556_v18 = vld [vmem:[%s6043_s10 + $0x28] sm:$0xff]   ;;  %s4399_s23 = sshll.u32 %s7641_s22, 2 }
  0x63   : > { %5142 = vmatpush3.bf16.msra.mxu0 %v6022_v1  ;;  %5188 = vmatpush3.bf16.msra.mxu1 %v6022_v1  ;;  %v5553_v15 = vld [vmem:[%s6043_s10 + $0x98] sm:$0xff]   ;;  %v5555_v17 = vld [vmem:[%s6043_s10 + $0xa0] sm:$0xff]   ;;  %v5557_v19 = vld [vmem:[%s6043_s10 + $0xa8] sm:$0xff]   ;;  %s7225_s26 = scalar_lea.vmem %s7417_s3, %s4399_s23 }
  0x64   : > { %5143 = vmatprep.subr.bf16.mxu0 %v6034_v2  ;;  %5189 = vmatprep.subr.bf16.mxu1 %v6034_v2  ;;  %v5558_v20 = vld [vmem:[%s6043_s10 + $0x30] sm:$0xff]   ;;  %v5560_v22 = vld [vmem:[%s6043_s10 + $0x38] sm:$0xff]   ;;  %v5562_v24 = vld [vmem:[%s6043_s10 + $0x40] sm:$0xff]  }
  0x65   : > { %v5559_v21 = vld [vmem:[%s6043_s10 + $0xb0] sm:$0xff]   ;;  %v5561_v23 = vld [vmem:[%s6043_s10 + $0xb8] sm:$0xff]   ;;  %v5563_v25 = vld [vmem:[%s6043_s10 + $0xc0] sm:$0xff]  }
  0x66   : > { %v5564_v26 = vld [vmem:[%s6043_s10 + $0x48] sm:$0xff]   ;;  %v5566_v28 = vld [vmem:[%s6043_s10 + $0x50] sm:$0xff]   ;;  %v5568_v30 = vld [vmem:[%s6043_s10 + $0x58] sm:$0xff]  }
  0x67   : > { %5144 = vmatpush3.bf16.msra.mxu0 %v6034_v2  ;;  %5190 = vmatpush3.bf16.msra.mxu1 %v6034_v2  ;;  %v5565_v27 = vld [vmem:[%s6043_s10 + $0xc8] sm:$0xff]   ;;  %v5567_v29 = vld [vmem:[%s6043_s10 + $0xd0] sm:$0xff]   ;;  %v5569_v31 = vld [vmem:[%s6043_s10 + $0xd8] sm:$0xff]  }
  0x68   : > { %5145 = vmatprep.subr.bf16.mxu0 %v6039_v3  ;;  %5191 = vmatprep.subr.bf16.mxu1 %v6039_v3  ;;  %v5570_v32 = vld [vmem:[%s6043_s10 + $0x60] sm:$0xff]   ;;  %v5572_v34 = vld [vmem:[%s6043_s10 + $0x68] sm:$0xff]   ;;  %v5574_v36 = vld [vmem:[%s6043_s10 + $0x70] sm:$0xff]  }
  0x69   : > { %v5571_v33 = vld [vmem:[%s6043_s10 + $0xe0] sm:$0xff]   ;;  %v5573_v35 = vld [vmem:[%s6043_s10 + $0xe8] sm:$0xff]   ;;  %v5575_v37 = vld [vmem:[%s6043_s10 + $0xf0] sm:$0xff]  }
  0x6a   : > { %v5576_v38 = vld [vmem:[%s6043_s10 + $0x78] sm:$0xff]   ;;  %v5578_v40 = vld [vmem:[%s6043_s10 + $0x100] sm:$0xff]   ;;  %v5580_v42 = vld [vmem:[%s6043_s10 + $0x108] sm:$0xff]  }
  0x6b   : > { %5146 = vmatpush3.bf16.msra.mxu0 %v6039_v3  ;;  %5192 = vmatpush3.bf16.msra.mxu1 %v6039_v3  ;;  %v5577_v39 = vld [vmem:[%s6043_s10 + $0xf8] sm:$0xff]   ;;  %v5579_v41 = vld [vmem:[%s6043_s10 + $0x180] sm:$0xff]   ;;  %v5581_v43 = vld [vmem:[%s6043_s10 + $0x188] sm:$0xff]  }
  0x6c   : > { %5147 = vmatprep.subr.bf16.mxu0 %v6058_v6  ;;  %5193 = vmatprep.subr.bf16.mxu1 %v6058_v6  ;;  %v5582_v44 = vld [vmem:[%s6043_s10 + $0x110] sm:$0xff]   ;;  %v5584_v46 = vld [vmem:[%s6043_s10 + $0x118] sm:$0xff]   ;;  %v5586_v48 = vld [vmem:[%s6043_s10 + $0x120] sm:$0xff]  }
  0x6d   : > { %v5583_v45 = vld [vmem:[%s6043_s10 + $0x190] sm:$0xff]   ;;  %v5585_v47 = vld [vmem:[%s6043_s10 + $0x198] sm:$0xff]   ;;  %v5587_v49 = vld [vmem:[%s6043_s10 + $0x1a0] sm:$0xff]  }
  0x6e   : > { %v5588_v50 = vld [vmem:[%s6043_s10 + $0x128] sm:$0xff]   ;;  %v5590_v52 = vld [vmem:[%s6043_s10 + $0x130] sm:$0xff]   ;;  %v5592_v54 = vld [vmem:[%s6043_s10 + $0x138] sm:$0xff]  }
  0x6f   : > { %5148 = vmatpush3.bf16.msra.mxu0 %v6058_v6  ;;  %5194 = vmatpush3.bf16.msra.mxu1 %v6058_v6  ;;  %v5589_v51 = vld [vmem:[%s6043_s10 + $0x1a8] sm:$0xff]   ;;  %v5591_v53 = vld [vmem:[%s6043_s10 + $0x1b0] sm:$0xff]   ;;  %v5593_v55 = vld [vmem:[%s6043_s10 + $0x1b8] sm:$0xff]  }
  0x70   : > { %5149 = vmatprep.subr.bf16.mxu0 %v6067_v7  ;;  %5195 = vmatprep.subr.bf16.mxu1 %v6067_v7  ;;  %v5594_v56 = vld [vmem:[%s6043_s10 + $0x140] sm:$0xff]   ;;  %v5596_v58 = vld [vmem:[%s6043_s10 + $0x148] sm:$0xff]   ;;  %v5598_v60 = vld [vmem:[%s6043_s10 + $0x150] sm:$0xff]  }
  0x71   : > { %v5595_v57 = vld [vmem:[%s6043_s10 + $0x1c0] sm:$0xff]   ;;  %v5597_v59 = vld [vmem:[%s6043_s10 + $0x1c8] sm:$0xff]   ;;  %v5599_v61 = vld [vmem:[%s6043_s10 + $0x1d0] sm:$0xff]  }
  0x72   : > { %v5600_v62 = vld [vmem:[%s6043_s10 + $0x158] sm:$0xff]   ;;  %v5602_v4 = vld [vmem:[%s6043_s10 + $0x160] sm:$0xff]  }
  0x73   : > { %5150 = vmatpush3.bf16.msra.mxu0 %v6067_v7  ;;  %5196 = vmatpush3.bf16.msra.mxu1 %v6067_v7  ;;  %v5601_v63 = vld [vmem:[%s6043_s10 + $0x1d8] sm:$0xff]   ;;  %v5603_v5 = vld [vmem:[%s6043_s10 + $0x1e0] sm:$0xff]  }
  0x74   : > { %5507 = vmatprep.subr.msk.bf16.mxu0 %vm1452_vm1, %v6076_v8  ;;  %5508 = vmatprep.subr.msk.bf16.mxu1 %vm1452_vm1, %v6076_v8 }
  0x77   : > { %5152 = vmatpush3.bf16.msra.mxu0 %v6086_v9  ;;  %5198 = vmatpush3.bf16.msra.mxu1 %v6086_v9 }
  0x78   : > { %5231 = vmatprep.subr.bf16.mxu0 %v6017_v0  ;;  %5277 = vmatprep.subr.bf16.mxu1 %v6017_v0 }
  0x7a   : > { %5154 = vmatmul.mubr.msk.bf16.vlgmr.msra.gmra.mrb[0].mxu0 %vm1403_vm0, %v5548_v10  ;;  %5200 = vmatmul.mubr.msk.bf16.vlgmr.msra.gmra.mrb[0].mxu1 %vm1403_vm0, %v5549_v11  ;;  %v5604_v10 = vld [vmem:[%s6043_s10 + $0x168] sm:$0xff]  }
  0x7b   : > { %5232 = vmatpush3.bf16.msra.mxu0 %v6017_v0  ;;  %5278 = vmatpush3.bf16.msra.mxu1 %v6017_v0  ;;  %v5605_v11 = vld [vmem:[%s6043_s10 + $0x1e8] sm:$0xff]  }
  0x7c   : > { %5157 = vmatprep.mubr.msk.bf16.mxu0 %vm1403_vm0, %v5550_v12  ;;  %5203 = vmatprep.mubr.msk.bf16.mxu1 %vm1403_vm0, %v5551_v13  ;;  %v5606_v12 = vld [vmem:[%s6043_s10 + $0x170] sm:$0xff]  }
  0x7d   : > { %5233 = vmatprep.subr.bf16.mxu0 %v6022_v1  ;;  %5279 = vmatprep.subr.bf16.mxu1 %v6022_v1  ;;  %v5607_v13 = vld [vmem:[%s6043_s10 + $0x1f0] sm:$0xff]  }
  0x7f   : > { %5234 = vmatpush3.bf16.msra.mxu0 %v6022_v1  ;;  %5280 = vmatpush3.bf16.msra.mxu1 %v6022_v1 }
  0x80   : > { %5235 = vmatprep.subr.bf16.mxu0 %v6034_v2  ;;  %5281 = vmatprep.subr.bf16.mxu1 %v6034_v2 }
  0x82   : > { %5158 = vmatmul.mubr.msk.bf16.gmra.mrb[4].mxu0 %vm1403_vm0, %v5552_v14  ;;  %5204 = vmatmul.mubr.msk.bf16.gmra.mrb[4].mxu1 %vm1403_vm0, %v5553_v15  ;;  %v5608_v14 = vld [vmem:[%s6043_s10 + $0x178] sm:$0xff]  }
  0x83   : > { %5161 = vmatprep.mubr.msk.bf16.mxu0 %vm1403_vm0, %v5554_v16  ;;  %5207 = vmatprep.mubr.msk.bf16.mxu1 %vm1403_vm0, %v5555_v17  ;;  %v5609_v15 = vld [vmem:[%s6043_s10 + $0x1f8] sm:$0xff]   ;;  %v5610_v16 = vld [vmem:[%s6043_s10 + $0x200] sm:$0xff]  }
  0x84   : > { %5236 = vmatpush3.bf16.msra.mxu0 %v6034_v2  ;;  %5282 = vmatpush3.bf16.msra.mxu1 %v6034_v2  ;;  %v5611_v17 = vld [vmem:[%s6043_s10 + $0x280] sm:$0xff]  }
  0x85   : > { %5237 = vmatprep.subr.bf16.mxu0 %v6039_v3  ;;  %5283 = vmatprep.subr.bf16.mxu1 %v6039_v3 }
  0x88   : > { %5238 = vmatpush3.bf16.msra.mxu0 %v6039_v3  ;;  %5284 = vmatpush3.bf16.msra.mxu1 %v6039_v3 }
  0x89   : > { %5239 = vmatprep.subr.bf16.mxu0 %v6058_v6  ;;  %5285 = vmatprep.subr.bf16.mxu1 %v6058_v6 }
  0x8a   : > { %5162 = vmatmul.mubr.msk.bf16.gmra.mrb[8].mxu0 %vm1403_vm0, %v5556_v18  ;;  %5208 = vmatmul.mubr.msk.bf16.gmra.mrb[8].mxu1 %vm1403_vm0, %v5557_v19  ;;  %v5612_v18 = vld [vmem:[%s6043_s10 + $0x208] sm:$0xff]  }
  0x8b   : > { %5165 = vmatprep.mubr.msk.bf16.mxu0 %vm1403_vm0, %v5558_v20  ;;  %5211 = vmatprep.mubr.msk.bf16.mxu1 %vm1403_vm0, %v5559_v21  ;;  %v5613_v19 = vld [vmem:[%s6043_s10 + $0x288] sm:$0xff]   ;;  %v5614_v20 = vld [vmem:[%s6043_s10 + $0x210] sm:$0xff]  }
  0x8c   : > { %5240 = vmatpush3.bf16.msra.mxu0 %v6058_v6  ;;  %5286 = vmatpush3.bf16.msra.mxu1 %v6058_v6  ;;  %v5615_v21 = vld [vmem:[%s6043_s10 + $0x290] sm:$0xff]  }
  0x8d   : > { %5241 = vmatprep.subr.bf16.mxu0 %v6067_v7  ;;  %5287 = vmatprep.subr.bf16.mxu1 %v6067_v7 }
  0x90   : > { %5242 = vmatpush3.bf16.msra.mxu0 %v6067_v7  ;;  %5288 = vmatpush3.bf16.msra.mxu1 %v6067_v7 }
  0x91   : > { %5509 = vmatprep.subr.msk.bf16.mxu0 %vm1452_vm1, %v6076_v8  ;;  %5510 = vmatprep.subr.msk.bf16.mxu1 %vm1452_vm1, %v6076_v8 }
  0x92   : > { %5166 = vmatmul.mubr.msk.bf16.gmra.mrb[12].mxu0 %vm1403_vm0, %v5560_v22  ;;  %5212 = vmatmul.mubr.msk.bf16.gmra.mrb[12].mxu1 %vm1403_vm0, %v5561_v23  ;;  %v5616_v22 = vld [vmem:[%s6043_s10 + $0x218] sm:$0xff]  }
  0x93   : > { %5169 = vmatprep.mubr.msk.bf16.mxu0 %vm1403_vm0, %v5562_v24  ;;  %5215 = vmatprep.mubr.msk.bf16.mxu1 %vm1403_vm0, %v5563_v25  ;;  %v5617_v23 = vld [vmem:[%s6043_s10 + $0x298] sm:$0xff]   ;;  %v5618_v24 = vld [vmem:[%s6043_s10 + $0x220] sm:$0xff]   ;;  %v5621_v25 = vld [vmem:[%s6043_s10 + $0x2a8] sm:$0xff]  }
  0x94   : > { %5244 = vmatpush3.bf16.msra.mxu0 %v6086_v9  ;;  %5290 = vmatpush3.bf16.msra.mxu1 %v6086_v9 }
  0x95   : > { %5323 = vmatprep.subr.bf16.mxu0 %v6017_v0  ;;  %5369 = vmatprep.subr.bf16.mxu1 %v6017_v0 }
  0x9a   : > { %5170 = vmatmul.mubr.msk.bf16.gmra.mrb[16].mxu0 %vm1403_vm0, %v5564_v26  ;;  %5216 = vmatmul.mubr.msk.bf16.gmra.mrb[16].mxu1 %vm1403_vm0, %v5565_v27  ;;  %v5622_v26 = vld [vmem:[%s6043_s10 + $0x230] sm:$0xff]  }
  0x9b   : > { %5173 = vmatprep.mubr.msk.bf16.mxu0 %vm1403_vm0, %v5566_v28  ;;  %5219 = vmatprep.mubr.msk.bf16.mxu1 %vm1403_vm0, %v5567_v29  ;;  %v5623_v27 = vld [vmem:[%s6043_s10 + $0x2b0] sm:$0xff]   ;;  %v5626_v28 = vld [vmem:[%s6043_s10 + $0x240] sm:$0xff]  }
  0x9c   : > { %v5627_v29 = vld [vmem:[%s6043_s10 + $0x2c0] sm:$0xff]  }
  0xa2   : > { %5174 = vmatmul.mubr.msk.bf16.gmra.mrb[20].mxu0 %vm1403_vm0, %v5568_v30  ;;  %5220 = vmatmul.mubr.msk.bf16.gmra.mrb[20].mxu1 %vm1403_vm0, %v5569_v31  ;;  %v5631_v30 = vld [vmem:[%s6043_s10 + $0x2d0] sm:$0xff]   ;;  %v5632_v31 = vld [vmem:[%s6043_s10 + $0x258] sm:$0xff]  }
  0xa3   : > { %5177 = vmatprep.mubr.msk.bf16.mxu0 %vm1403_vm0, %v5570_v32  ;;  %5223 = vmatprep.mubr.msk.bf16.mxu1 %vm1403_vm0, %v5571_v33  ;;  %v5633_v32 = vld [vmem:[%s6043_s10 + $0x2d8] sm:$0xff]   ;;  %v5635_v33 = vld [vmem:[%s6043_s10 + $0x2e0] sm:$0xff]  }
  0xaa   : > { %5178 = vmatmul.mubr.msk.bf16.gmra.mrb[24].mxu0 %vm1403_vm0, %v5572_v34  ;;  %5224 = vmatmul.mubr.msk.bf16.gmra.mrb[24].mxu1 %vm1403_vm0, %v5573_v35  ;;  %v5636_v34 = vld [vmem:[%s6043_s10 + $0x268] sm:$0xff]  }
  0xab   : > { %5181 = vmatprep.mubr.msk.bf16.mxu0 %vm1403_vm0, %v5574_v36  ;;  %5227 = vmatprep.mubr.msk.bf16.mxu1 %vm1403_vm0, %v5575_v37  ;;  %v5637_v35 = vld [vmem:[%s6043_s10 + $0x2e8] sm:$0xff]   ;;  %v5638_v36 = vld [vmem:[%s6043_s10 + $0x270] sm:$0xff]  }
  0xac   : > { %v5639_v37 = vld [vmem:[%s6043_s10 + $0x2f0] sm:$0xff]  }
  0xb2   : > { %5182 = vmatmul.mubr.msk.bf16.gmra.mrb[28].mxu0 %vm1403_vm0, %v5576_v38  ;;  %5228 = vmatmul.mubr.msk.bf16.gmra.mrb[28].mxu1 %vm1403_vm0, %v5577_v39  ;;  %v5640_v38 = vld [vmem:[%s6043_s10 + $0x278] sm:$0xff]  }
  0xb3   : > { %5245 = vmatprep.mubr.msk.bf16.mxu0 %vm1403_vm0, %v5578_v40  ;;  %5291 = vmatprep.mubr.msk.bf16.mxu1 %vm1403_vm0, %v5579_v41  ;;  %v5641_v39 = vld [vmem:[%s6043_s10 + $0x2f8] sm:$0xff]   ;;  %v5642_v40 = vld [vmem:[%s6043_s10 + $0x300] sm:$0xff]  }
  0xb4   : > { %v5643_v41 = vld [vmem:[%s6043_s10 + $0x380] sm:$0xff]  }
  0xba   : > { %5246 = vmatmul.mubr.msk.bf16.vlgmr.msra.gmra.mrb[32].mxu0 %vm1403_vm0, %v5580_v42  ;;  %5292 = vmatmul.mubr.msk.bf16.vlgmr.msra.gmra.mrb[32].mxu1 %vm1403_vm0, %v5581_v43  ;;  %v5644_v42 = vld [vmem:[%s6043_s10 + $0x308] sm:$0xff]  }
  0xbb   : > { %5324 = vmatpush3.bf16.msra.mxu0 %v6017_v0  ;;  %5370 = vmatpush3.bf16.msra.mxu1 %v6017_v0  ;;  %v5645_v43 = vld [vmem:[%s6043_s10 + $0x388] sm:$0xff]  }
  0xbc   : > { %5249 = vmatprep.mubr.msk.bf16.mxu0 %vm1403_vm0, %v5582_v44  ;;  %5295 = vmatprep.mubr.msk.bf16.mxu1 %vm1403_vm0, %v5583_v45  ;;  %v5646_v44 = vld [vmem:[%s6043_s10 + $0x310] sm:$0xff]  }
  0xbd   : > { %5325 = vmatprep.subr.bf16.mxu0 %v6022_v1  ;;  %5371 = vmatprep.subr.bf16.mxu1 %v6022_v1  ;;  %v5647_v45 = vld [vmem:[%s6043_s10 + $0x390] sm:$0xff]  }
  0xbf   : > { %5326 = vmatpush3.bf16.msra.mxu0 %v6022_v1  ;;  %5372 = vmatpush3.bf16.msra.mxu1 %v6022_v1 }
  0xc0   : > { %5327 = vmatprep.subr.bf16.mxu0 %v6034_v2  ;;  %5373 = vmatprep.subr.bf16.mxu1 %v6034_v2 }
  0xc2   : > { %5250 = vmatmul.mubr.msk.bf16.gmra.mrb[36].mxu0 %vm1403_vm0, %v5584_v46  ;;  %5296 = vmatmul.mubr.msk.bf16.gmra.mrb[36].mxu1 %vm1403_vm0, %v5585_v47  ;;  %v5648_v46 = vld [vmem:[%s6043_s10 + $0x318] sm:$0xff]  }
  0xc3   : > { %5253 = vmatprep.mubr.msk.bf16.mxu0 %vm1403_vm0, %v5586_v48  ;;  %5299 = vmatprep.mubr.msk.bf16.mxu1 %vm1403_vm0, %v5587_v49  ;;  %v5649_v47 = vld [vmem:[%s6043_s10 + $0x398] sm:$0xff]   ;;  %v5650_v48 = vld [vmem:[%s6043_s10 + $0x320] sm:$0xff]  }
  0xc4   : > { %5328 = vmatpush3.bf16.msra.mxu0 %v6034_v2  ;;  %5374 = vmatpush3.bf16.msra.mxu1 %v6034_v2  ;;  %v5651_v49 = vld [vmem:[%s6043_s10 + $0x3a0] sm:$0xff]  }
  0xc5   : > { %5329 = vmatprep.subr.bf16.mxu0 %v6039_v3  ;;  %5375 = vmatprep.subr.bf16.mxu1 %v6039_v3 }
  0xc8   : > { %5330 = vmatpush3.bf16.msra.mxu0 %v6039_v3  ;;  %5376 = vmatpush3.bf16.msra.mxu1 %v6039_v3 }
  0xc9   : > { %5331 = vmatprep.subr.bf16.mxu0 %v6058_v6  ;;  %5377 = vmatprep.subr.bf16.mxu1 %v6058_v6 }
  0xca   : > { %5254 = vmatmul.mubr.msk.bf16.gmra.mrb[40].mxu0 %vm1403_vm0, %v5588_v50  ;;  %5300 = vmatmul.mubr.msk.bf16.gmra.mrb[40].mxu1 %vm1403_vm0, %v5589_v51  ;;  %v5652_v50 = vld [vmem:[%s6043_s10 + $0x328] sm:$0xff]  }
  0xcb   : > { %5257 = vmatprep.mubr.msk.bf16.mxu0 %vm1403_vm0, %v5590_v52  ;;  %5303 = vmatprep.mubr.msk.bf16.mxu1 %vm1403_vm0, %v5591_v53  ;;  %v5653_v51 = vld [vmem:[%s6043_s10 + $0x3a8] sm:$0xff]   ;;  %v5654_v52 = vld [vmem:[%s6043_s10 + $0x330] sm:$0xff]  }
  0xcc   : > { %5332 = vmatpush3.bf16.msra.mxu0 %v6058_v6  ;;  %5378 = vmatpush3.bf16.msra.mxu1 %v6058_v6  ;;  %v5655_v53 = vld [vmem:[%s6043_s10 + $0x3b0] sm:$0xff]  }
  0xcd   : > { %5333 = vmatprep.subr.bf16.mxu0 %v6067_v7  ;;  %5379 = vmatprep.subr.bf16.mxu1 %v6067_v7 }
  0xd0   : > { %5334 = vmatpush3.bf16.msra.mxu0 %v6067_v7  ;;  %5380 = vmatpush3.bf16.msra.mxu1 %v6067_v7 }
  0xd1   : > { %5511 = vmatprep.subr.msk.bf16.mxu0 %vm1452_vm1, %v6076_v8  ;;  %5512 = vmatprep.subr.msk.bf16.mxu1 %vm1452_vm1, %v6076_v8 }
  0xd2   : > { %5258 = vmatmul.mubr.msk.bf16.gmra.mrb[44].mxu0 %vm1403_vm0, %v5592_v54  ;;  %5304 = vmatmul.mubr.msk.bf16.gmra.mrb[44].mxu1 %vm1403_vm0, %v5593_v55 }
  0xd3   : > { %5261 = vmatprep.mubr.msk.bf16.mxu0 %vm1403_vm0, %v5594_v56  ;;  %5307 = vmatprep.mubr.msk.bf16.mxu1 %vm1403_vm0, %v5595_v57 }
  0xd4   : > { %5336 = vmatpush3.bf16.msra.mxu0 %v6086_v9  ;;  %5382 = vmatpush3.bf16.msra.mxu1 %v6086_v9 }
  0xd5   : > { %5415 = vmatprep.subr.bf16.mxu0 %v6017_v0  ;;  %5461 = vmatprep.subr.bf16.mxu1 %v6017_v0 }
  0xda   : > { %5262 = vmatmul.mubr.msk.bf16.gmra.mrb[48].mxu0 %vm1403_vm0, %v5596_v58  ;;  %5308 = vmatmul.mubr.msk.bf16.gmra.mrb[48].mxu1 %vm1403_vm0, %v5597_v59  ;;  %v5656_v59 = vld [vmem:[%s6043_s10 + $0x338] sm:$0xff]  }
  0xdb   : > { %5265 = vmatprep.mubr.msk.bf16.mxu0 %vm1403_vm0, %v5598_v60  ;;  %5311 = vmatprep.mubr.msk.bf16.mxu1 %vm1403_vm0, %v5599_v61  ;;  %v5657_v60 = vld [vmem:[%s6043_s10 + $0x3b8] sm:$0xff]  }
  0xe2   : > { %5266 = vmatmul.mubr.msk.bf16.gmra.mrb[52].mxu0 %vm1403_vm0, %v5600_v62  ;;  %5312 = vmatmul.mubr.msk.bf16.gmra.mrb[52].mxu1 %vm1403_vm0, %v5601_v63 }
  0xe3   : > { %5269 = vmatprep.mubr.msk.bf16.mxu0 %vm1403_vm0, %v5602_v4  ;;  %5315 = vmatprep.mubr.msk.bf16.mxu1 %vm1403_vm0, %v5603_v5  ;;  %v5658_v4 = vld [vmem:[%s6043_s10 + $0x340] sm:$0xff]  }
  0xe4   : > { %v5659_v5 = vld [vmem:[%s6043_s10 + $0x3c0] sm:$0xff]  }
  0xea   : > { %5270 = vmatmul.mubr.msk.bf16.gmra.mrb[56].mxu0 %vm1403_vm0, %v5604_v10  ;;  %5316 = vmatmul.mubr.msk.bf16.gmra.mrb[56].mxu1 %vm1403_vm0, %v5605_v11 }
  0xeb   : > { %5273 = vmatprep.mubr.msk.bf16.mxu0 %vm1403_vm0, %v5606_v12  ;;  %5319 = vmatprep.mubr.msk.bf16.mxu1 %vm1403_vm0, %v5607_v13 }
  0xf2   : > { %5274 = vmatmul.mubr.msk.bf16.gmra.mrb[60].mxu0 %vm1403_vm0, %v5608_v14  ;;  %5320 = vmatmul.mubr.msk.bf16.gmra.mrb[60].mxu1 %vm1403_vm0, %v5609_v15 }
  0xf3   : > { %5337 = vmatprep.mubr.msk.bf16.mxu0 %vm1403_vm0, %v5610_v16  ;;  %5383 = vmatprep.mubr.msk.bf16.mxu1 %vm1403_vm0, %v5611_v17 }
  0xfa   : > { %5338 = vmatmul.mubr.msk.bf16.vlgmr.msra.gmra.mrb[64].mxu0 %vm1403_vm0, %v5612_v18  ;;  %5384 = vmatmul.mubr.msk.bf16.vlgmr.msra.gmra.mrb[64].mxu1 %vm1403_vm0, %v5613_v19  ;;  %v5660_v19 = vld [vmem:[%s6043_s10 + $0x348] sm:$0xff]  }
  0xfb   : > { %5416 = vmatpush3.bf16.msra.mxu0 %v6017_v0  ;;  %5462 = vmatpush3.bf16.msra.mxu1 %v6017_v0  ;;  %v5619_v0 = vld [vmem:[%s6043_s10 + $0x2a0] sm:$0xff]  }
  0xfc   : > { %5341 = vmatprep.mubr.msk.bf16.mxu0 %vm1403_vm0, %v5614_v20  ;;  %5387 = vmatprep.mubr.msk.bf16.mxu1 %vm1403_vm0, %v5615_v21  ;;  %v5661_v20 = vld [vmem:[%s6043_s10 + $0x3c8] sm:$0xff]  }
  0xfd   : > { %5417 = vmatprep.subr.bf16.mxu0 %v6022_v1  ;;  %5463 = vmatprep.subr.bf16.mxu1 %v6022_v1 }
  0xff   : > { %5418 = vmatpush3.bf16.msra.mxu0 %v6022_v1  ;;  %5464 = vmatpush3.bf16.msra.mxu1 %v6022_v1  ;;  %v5620_v1 = vld [vmem:[%s6043_s10 + $0x228] sm:$0xff]  }
 0x100   : > { %5419 = vmatprep.subr.bf16.mxu0 %v6034_v2  ;;  %5465 = vmatprep.subr.bf16.mxu1 %v6034_v2 }
 0x102   : > { %5342 = vmatmul.mubr.msk.bf16.gmra.mrb[68].mxu0 %vm1403_vm0, %v5616_v22  ;;  %5388 = vmatmul.mubr.msk.bf16.gmra.mrb[68].mxu1 %vm1403_vm0, %v5617_v23 }
 0x103   : > { %5345 = vmatprep.mubr.msk.bf16.mxu0 %vm1403_vm0, %v5618_v24  ;;  %5391 = vmatprep.mubr.msk.bf16.mxu1 %vm1403_vm0, %v5619_v0  ;;  %v5662_v24 = vld [vmem:[%s6043_s10 + $0x350] sm:$0xff]  }
 0x104   : > { %5420 = vmatpush3.bf16.msra.mxu0 %v6034_v2  ;;  %5466 = vmatpush3.bf16.msra.mxu1 %v6034_v2  ;;  %v5624_v2 = vld [vmem:[%s6043_s10 + $0x238] sm:$0xff]   ;;  %v5663_v0 = vld [vmem:[%s6043_s10 + $0x3d0] sm:$0xff]  }
 0x105   : > { %5421 = vmatprep.subr.bf16.mxu0 %v6039_v3  ;;  %5467 = vmatprep.subr.bf16.mxu1 %v6039_v3 }
 0x108   : > { %5422 = vmatpush3.bf16.msra.mxu0 %v6039_v3  ;;  %5468 = vmatpush3.bf16.msra.mxu1 %v6039_v3  ;;  %v5625_v3 = vld [vmem:[%s6043_s10 + $0x2b8] sm:$0xff]  }
 0x109   : > { %5423 = vmatprep.subr.bf16.mxu0 %v6058_v6  ;;  %5469 = vmatprep.subr.bf16.mxu1 %v6058_v6 }
 0x10a   : > { %5346 = vmatmul.mubr.msk.bf16.gmra.mrb[72].mxu0 %vm1403_vm0, %v5620_v1  ;;  %5392 = vmatmul.mubr.msk.bf16.gmra.mrb[72].mxu1 %vm1403_vm0, %v5621_v25 }
 0x10b   : > { %5349 = vmatprep.mubr.msk.bf16.mxu0 %vm1403_vm0, %v5622_v26  ;;  %5395 = vmatprep.mubr.msk.bf16.mxu1 %vm1403_vm0, %v5623_v27 }
 0x10c   : > { %5424 = vmatpush3.bf16.msra.mxu0 %v6058_v6  ;;  %5470 = vmatpush3.bf16.msra.mxu1 %v6058_v6  ;;  %v5628_v6 = vld [vmem:[%s6043_s10 + $0x248] sm:$0xff]  }
 0x10d   : > { %5425 = vmatprep.subr.bf16.mxu0 %v6067_v7  ;;  %5471 = vmatprep.subr.bf16.mxu1 %v6067_v7 }
 0x110   : > { %5426 = vmatpush3.bf16.msra.mxu0 %v6067_v7  ;;  %5472 = vmatpush3.bf16.msra.mxu1 %v6067_v7  ;;  %v5629_v7 = vld [vmem:[%s6043_s10 + $0x2c8] sm:$0xff]  }
 0x111   : > { %5513 = vmatprep.subr.msk.bf16.mxu0 %vm1452_vm1, %v6076_v8  ;;  %5514 = vmatprep.subr.msk.bf16.mxu1 %vm1452_vm1, %v6076_v8  ;;  %v5630_v8 = vld [vmem:[%s6043_s10 + $0x250] sm:$0xff]  }
 0x112   : > { %5350 = vmatmul.mubr.msk.bf16.gmra.mrb[76].mxu0 %vm1403_vm0, %v5624_v2  ;;  %5396 = vmatmul.mubr.msk.bf16.gmra.mrb[76].mxu1 %vm1403_vm0, %v5625_v3 }
 0x113   : > { %5353 = vmatprep.mubr.msk.bf16.mxu0 %vm1403_vm0, %v5626_v28  ;;  %5399 = vmatprep.mubr.msk.bf16.mxu1 %vm1403_vm0, %v5627_v29 }
 0x114   : > { %5428 = vmatpush3.bf16.msra.mxu0 %v6086_v9  ;;  %5474 = vmatpush3.bf16.msra.mxu1 %v6086_v9  ;;  %v5634_v9 = vld [vmem:[%s6043_s10 + $0x260] sm:$0xff]  }
 0x11a   : > { %5354 = vmatmul.mubr.msk.bf16.gmra.mrb[80].mxu0 %vm1403_vm0, %v5628_v6  ;;  %5400 = vmatmul.mubr.msk.bf16.gmra.mrb[80].mxu1 %vm1403_vm0, %v5629_v7  ;;  %v5664_v7 = vld [vmem:[%s6043_s10 + $0x358] sm:$0xff]  }
 0x11b   : > { %5357 = vmatprep.mubr.msk.bf16.mxu0 %vm1403_vm0, %v5630_v8  ;;  %5403 = vmatprep.mubr.msk.bf16.mxu1 %vm1403_vm0, %v5631_v30  ;;  %v5665_v8 = vld [vmem:[%s6043_s10 + $0x3d8] sm:$0xff]  }
 0x122   : > { %5358 = vmatmul.mubr.msk.bf16.gmra.mrb[84].mxu0 %vm1403_vm0, %v5632_v31  ;;  %5404 = vmatmul.mubr.msk.bf16.gmra.mrb[84].mxu1 %vm1403_vm0, %v5633_v32 }
 0x123   : > { %5361 = vmatprep.mubr.msk.bf16.mxu0 %vm1403_vm0, %v5634_v9  ;;  %5407 = vmatprep.mubr.msk.bf16.mxu1 %vm1403_vm0, %v5635_v33  ;;  %v5666_v9 = vld [vmem:[%s6043_s10 + $0x360] sm:$0xff]  }
 0x124   : > { %v5667_v33 = vld [vmem:[%s6043_s10 + $0x3e0] sm:$0xff]  }
 0x12a   : > { %5362 = vmatmul.mubr.msk.bf16.gmra.mrb[88].mxu0 %vm1403_vm0, %v5636_v34  ;;  %5408 = vmatmul.mubr.msk.bf16.gmra.mrb[88].mxu1 %vm1403_vm0, %v5637_v35 }
 0x12b   : > { %5365 = vmatprep.mubr.msk.bf16.mxu0 %vm1403_vm0, %v5638_v36  ;;  %5411 = vmatprep.mubr.msk.bf16.mxu1 %vm1403_vm0, %v5639_v37 }
 0x132   : > { %5366 = vmatmul.mubr.msk.bf16.gmra.mrb[92].mxu0 %vm1403_vm0, %v5640_v38  ;;  %5412 = vmatmul.mubr.msk.bf16.gmra.mrb[92].mxu1 %vm1403_vm0, %v5641_v39 }
 0x133   : > { %5429 = vmatprep.mubr.msk.bf16.mxu0 %vm1403_vm0, %v5642_v40  ;;  %5475 = vmatprep.mubr.msk.bf16.mxu1 %vm1403_vm0, %v5643_v41 }
 0x13a   : > { %5430 = vmatmul.mubr.msk.bf16.vlgmr.msra.gmra.mrb[96].mxu0 %vm1403_vm0, %v5644_v42  ;;  %5476 = vmatmul.mubr.msk.bf16.vlgmr.msra.gmra.mrb[96].mxu1 %vm1403_vm0, %v5645_v43  ;;  %v5668_v43 = vld [vmem:[%s6043_s10 + $0x368] sm:$0xff]  }
 0x13b   : > { %5433 = vmatprep.mubr.msk.bf16.mxu0 %vm1403_vm0, %v5646_v44  ;;  %5479 = vmatprep.mubr.msk.bf16.mxu1 %vm1403_vm0, %v5647_v45  ;;  %v5669_v44 = vld [vmem:[%s6043_s10 + $0x3e8] sm:$0xff]  }
 0x142   : > { %5434 = vmatmul.mubr.msk.bf16.gmra.mrb[100].mxu0 %vm1403_vm0, %v5648_v46  ;;  %5480 = vmatmul.mubr.msk.bf16.gmra.mrb[100].mxu1 %vm1403_vm0, %v5649_v47 }
 0x143   : > { %5437 = vmatprep.mubr.msk.bf16.mxu0 %vm1403_vm0, %v5650_v48  ;;  %5483 = vmatprep.mubr.msk.bf16.mxu1 %vm1403_vm0, %v5651_v49  ;;  %v5670_v48 = vld [vmem:[%s6043_s10 + $0x370] sm:$0xff]  }
 0x144   : > { %v5671_v49 = vld [vmem:[%s6043_s10 + $0x3f0] sm:$0xff]  }
 0x14a   : > { %5438 = vmatmul.mubr.msk.bf16.gmra.mrb[104].mxu0 %vm1403_vm0, %v5652_v50  ;;  %5484 = vmatmul.mubr.msk.bf16.gmra.mrb[104].mxu1 %vm1403_vm0, %v5653_v51 }
 0x14b   : > { %5441 = vmatprep.mubr.msk.bf16.mxu0 %vm1403_vm0, %v5654_v52  ;;  %5487 = vmatprep.mubr.msk.bf16.mxu1 %vm1403_vm0, %v5655_v53 }
 0x14d   : > { %v6396_v54 = vpop.f32.mrb[0].mxu0  ;;  %v6398_v55 = vpop.f32.mrb[0].mxu1 }
 0x14e   : > { %v6402_v57 = vpop.f32.mrb[1].mxu0  ;;  %v6404_v58 = vpop.f32.mrb[1].mxu1 }
 0x14f   : > { %v6410_v62 = vpop.f32.mrb[2].mxu0  ;;  %v6412_v63 = vpop.f32.mrb[2].mxu1  ;;  %v7472_v53 = vmax.f32 %v6402_v57, %v6404_v58 }
 0x150   : > { %v6418_v11 = vpop.f32.mrb[3].mxu0  ;;  %v6420_v12 = vpop.f32.mrb[3].mxu1 }
 0x151   : > { %v7474_v57 = vmax.f32 %v6418_v11, %v6420_v12 }
 0x152   : > { %5442 = vmatmul.mubr.msk.bf16.gmra.mrb[108].mxu0 %vm1403_vm0, %v5656_v59  ;;  %5488 = vmatmul.mubr.msk.bf16.gmra.mrb[108].mxu1 %vm1403_vm0, %v5657_v60 }
 0x153   : > { %5445 = vmatprep.mubr.msk.bf16.mxu0 %vm1403_vm0, %v5658_v4  ;;  %5491 = vmatprep.mubr.msk.bf16.mxu1 %vm1403_vm0, %v5659_v5 }
 0x155   : > { %v6428_v14 = vpop.f32.mrb[4].mxu0  ;;  %v6430_v15 = vpop.f32.mrb[4].mxu1 }
 0x156   : > { %v6434_v17 = vpop.f32.mrb[5].mxu0  ;;  %v6436_v18 = vpop.f32.mrb[5].mxu1 }
 0x157   : > { %v6442_v22 = vpop.f32.mrb[6].mxu0  ;;  %v6444_v23 = vpop.f32.mrb[6].mxu1  ;;  %v7476_v11 = vmax.f32 %v6434_v17, %v6436_v18 }
 0x158   : > { %v6450_v25 = vpop.f32.mrb[7].mxu0  ;;  %v6452_v26 = vpop.f32.mrb[7].mxu1 }
 0x159   : > { %v7478_v17 = vmax.f32 %v6450_v25, %v6452_v26 }
 0x15a   : > { %5446 = vmatmul.mubr.msk.bf16.gmra.mrb[112].mxu0 %vm1403_vm0, %v5660_v19  ;;  %5492 = vmatmul.mubr.msk.bf16.gmra.mrb[112].mxu1 %vm1403_vm0, %v5661_v20  ;;  %v5672_v20 = vld [vmem:[%s6043_s10 + $0x378] sm:$0xff]  }
 0x15b   : > { %5449 = vmatprep.mubr.msk.bf16.mxu0 %vm1403_vm0, %v5662_v24  ;;  %5495 = vmatprep.mubr.msk.bf16.mxu1 %vm1403_vm0, %v5663_v0  ;;  %v5673_v24 = vld [vmem:[%s6043_s10 + $0x3f8] sm:$0xff]   ;;  %v7471_v0 = vmax.f32 %v6396_v54, %v6398_v55 }
 0x15d   : > { %v6460_v2 = vpop.f32.mrb[8].mxu0  ;;  %v6462_v3 = vpop.f32.mrb[8].mxu1 }
 0x15e   : > { %v6466_v29 = vpop.f32.mrb[9].mxu0  ;;  %v6468_v6 = vpop.f32.mrb[9].mxu1 }
 0x15f   : > { %v6474_v31 = vpop.f32.mrb[10].mxu0  ;;  %v6476_v32 = vpop.f32.mrb[10].mxu1  ;;  %v7480_v25 = vmax.f32 %v6466_v29, %v6468_v6 }
 0x160   : > { %v6482_v35 = vpop.f32.mrb[11].mxu0  ;;  %v6484_v36 = vpop.f32.mrb[11].mxu1 }
 0x161   : > { %v7482_v29 = vmax.f32 %v6482_v35, %v6484_v36 }
 0x162   : > { %5450 = vmatmul.mubr.msk.bf16.gmra.mrb[116].mxu0 %vm1403_vm0, %v5664_v7  ;;  %5496 = vmatmul.mubr.msk.bf16.gmra.mrb[116].mxu1 %vm1403_vm0, %v5665_v8 }
 0x163   : > { %5453 = vmatprep.mubr.msk.bf16.mxu0 %vm1403_vm0, %v5666_v9  ;;  %5499 = vmatprep.mubr.msk.bf16.mxu1 %vm1403_vm0, %v5667_v33 }
 0x165   : > { %v6492_v38 = vpop.f32.mrb[12].mxu0  ;;  %v6494_v39 = vpop.f32.mrb[12].mxu1 }
 0x166   : > { %v6498_v41 = vpop.f32.mrb[13].mxu0  ;;  %v6500_v42 = vpop.f32.mrb[13].mxu1 }
 0x167   : > { %v6506_v46 = vpop.f32.mrb[14].mxu0  ;;  %v6508_v47 = vpop.f32.mrb[14].mxu1  ;;  %v7484_v35 = vmax.f32 %v6498_v41, %v6500_v42 }
 0x168   : > { %v6514_v51 = vpop.f32.mrb[15].mxu0  ;;  %v6516_v52 = vpop.f32.mrb[15].mxu1 }
 0x169   : > { %v7486_v41 = vmax.f32 %v6514_v51, %v6516_v52 }
 0x16a   : > { %5454 = vmatmul.mubr.msk.bf16.gmra.mrb[120].mxu0 %vm1403_vm0, %v5668_v43  ;;  %5500 = vmatmul.mubr.msk.bf16.gmra.mrb[120].mxu1 %vm1403_vm0, %v5669_v44 }
 0x16b   : > { %5457 = vmatprep.mubr.msk.bf16.mxu0 %vm1403_vm0, %v5670_v48  ;;  %5503 = vmatprep.mubr.msk.bf16.mxu1 %vm1403_vm0, %v5671_v49 }
 0x16d   : > { %v6524_v59 = vpop.f32.mrb[16].mxu0  ;;  %v6526_v60 = vpop.f32.mrb[16].mxu1 }
 0x16e   : > { %v6530_v5 = vpop.f32.mrb[17].mxu0  ;;  %v6532_v19 = vpop.f32.mrb[17].mxu1 }
 0x16f   : > { %v6538_v7 = vpop.f32.mrb[18].mxu0  ;;  %v6540_v8 = vpop.f32.mrb[18].mxu1  ;;  %v7488_v51 = vmax.f32 %v6530_v5, %v6532_v19 }
 0x170   : > { %v6544_v33 = vpop.f32.mrb[19].mxu0  ;;  %v6546_v43 = vpop.f32.mrb[19].mxu1 }
 0x171   : > { %v7490_v5 = vmax.f32 %v6544_v33, %v6546_v43 }
 0x172   : > { %5458 = vmatmul.mubr.msk.bf16.gmra.mrb[124].mxu0 %vm1403_vm0, %v5672_v20  ;;  %5504 = vmatmul.mubr.msk.bf16.gmra.mrb[124].mxu1 %vm1403_vm0, %v5673_v24 }
 0x175   : > { %v6552_v48 = vpop.f32.mrb[20].mxu0  ;;  %v6554_v49 = vpop.f32.mrb[20].mxu1 }
 0x176   : > { %v6558_v4 = vpop.f32.mrb[21].mxu0  ;;  %v6560_v9 = vpop.f32.mrb[21].mxu1 }
 0x177   : > { %v6564_v50 = vpop.f32.mrb[22].mxu0  ;;  %v6566_v44 = vpop.f32.mrb[22].mxu1  ;;  %v7492_v33 = vmax.f32 %v6558_v4, %v6560_v9 }
 0x178   : > { %v6570_v24 = vpop.f32.mrb[23].mxu0  ;;  %v6572_v45 = vpop.f32.mrb[23].mxu1 }
 0x179   : > { %v7497_v4 = vmax.f32 %v6570_v24, %v6572_v45 }
 0x17d   : > { %v6576_v40 = vpop.f32.mrb[24].mxu0  ;;  %v6578_v37 = vpop.f32.mrb[24].mxu1 }
 0x17e   : > { %v6582_v34 = vpop.f32.mrb[25].mxu0  ;;  %v6584_v30 = vpop.f32.mrb[25].mxu1 }
 0x17f   : > { %7459 = vst [vmem:[#allocation3_spill] sm:$0xff] %v6584_v30  ;;  %v6588_v28 = vpop.f32.mrb[26].mxu0  ;;  %v6590_v27 = vpop.f32.mrb[26].mxu1 }
 0x180   : > { %7460 = vst [vmem:[#allocation4_spill] sm:$0xff] %v6588_v28  ;;  %7461 = vst [vmem:[#allocation5_spill] sm:$0xff] %v6590_v27  ;;  %v6594_v1 = vpop.f32.mrb[27].mxu0  ;;  %v6596_v21 = vpop.f32.mrb[27].mxu1 }
 0x181   : > { %7462 = vst [vmem:[#allocation6_spill] sm:$0xff] %v6594_v1  ;;  %7463 = vst [vmem:[#allocation7_spill] sm:$0xff] %v6596_v21 }
 0x185   : > { %v6600_v16 = vpop.f32.mrb[28].mxu0  ;;  %v6602_v13 = vpop.f32.mrb[28].mxu1 }
 0x186   : > { %7464 = vst [vmem:[#allocation8_spill] sm:$0xff] %v6600_v16  ;;  %7465 = vst [vmem:[#allocation9_spill] sm:$0xff] %v6602_v13  ;;  %v6606_v10 = vpop.f32.mrb[29].mxu0  ;;  %v6608_v61 = vpop.f32.mrb[29].mxu1  ;;  %v7503_v45 = vld [vmem:[#allocation3_spill] sm:$0xff] }
 0x187   : > { %7466 = vst [vmem:[#allocation10_spill] sm:$0xff] %v6606_v10  ;;  %7467 = vst [vmem:[#allocation11_spill] sm:$0xff] %v6608_v61  ;;  %v6612_v56 = vpop.f32.mrb[30].mxu0  ;;  %v6614_v27 = vpop.f32.mrb[30].mxu1  ;;  %v7504_v24 = vmax.f32 %v6582_v34, %v7503_v45 }
 0x188   : > { %7468 = vst [vmem:[#allocation12_spill] sm:$0xff] %v6612_v56  ;;  %7469 = vst [vmem:[#allocation13_spill] sm:$0xff] %v6614_v27  ;;  %v6618_v21 = vpop.f32.mrb[31].mxu0  ;;  %v6620_v1 = vpop.f32.mrb[31].mxu1  ;;  %v7511_v34 = vld [vmem:[#allocation6_spill] sm:$0xff] }
 0x189   : > { %7470 = vst [vmem:[#allocation14_spill] sm:$0xff] %v6620_v1  ;;  %v7473_v1 = vmax.f32 %v6410_v62, %v6412_v63  ;;  %v7475_v63 = vmax.f32 %v6428_v14, %v6430_v15 }
 0x18d   : > { %v5247_v13 = vpop.f32.mrb[32].mxu0  ;;  %v6624_v16 = vpop.f32.mrb[32].mxu1 }
 0x18e   : > { %v6629_v61 = vmax.f32 %v7471_v0, %v5247_v13  ;;  %v2166_v10 = vpop.f32.mrb[33].mxu0  ;;  %v6631_v28 = vpop.f32.mrb[33].mxu1 }
 0x18f   : > { %v6636_v27 = vmax.f32 %v7472_v53, %v2166_v10  ;;  %v5248_v56 = vpop.f32.mrb[34].mxu0  ;;  %v6638_v30 = vpop.f32.mrb[34].mxu1  ;;  %v7477_v10 = vmax.f32 %v6442_v22, %v6444_v23 }
 0x190   : > { %v6645_v54 = vmax.f32 %v7473_v1, %v5248_v56  ;;  %v2169_v55 = vpop.f32.mrb[35].mxu0  ;;  %v6647_v13 = vpop.f32.mrb[35].mxu1 }
 0x191   : > { %v6654_v58 = vmax.f32 %v7474_v57, %v2169_v55 }
 0x195   : > { %v5251_v62 = vpop.f32.mrb[36].mxu0  ;;  %v6660_v56 = vpop.f32.mrb[36].mxu1 }
 0x196   : > { %v6665_v1 = vmax.f32 %v7475_v63, %v5251_v62  ;;  %v2182_v0 = vpop.f32.mrb[37].mxu0  ;;  %v6667_v20 = vpop.f32.mrb[37].mxu1 }
 0x197   : > { %v6672_v12 = vmax.f32 %v7476_v11, %v2182_v0  ;;  %v5252_v55 = vpop.f32.mrb[38].mxu0  ;;  %v6674_v57 = vpop.f32.mrb[38].mxu1  ;;  %v7481_v0 = vmax.f32 %v6474_v31, %v6476_v32 }
 0x198   : > { %v6681_v14 = vmax.f32 %v7477_v10, %v5252_v55  ;;  %v2185_v15 = vpop.f32.mrb[39].mxu0  ;;  %v6683_v62 = vpop.f32.mrb[39].mxu1  ;;  %v7479_v10 = vmax.f32 %v6460_v2, %v6462_v3 }
 0x199   : > { %v6690_v18 = vmax.f32 %v7478_v17, %v2185_v15 }
 0x19d   : > { %v5255_v22 = vpop.f32.mrb[40].mxu0  ;;  %v6696_v23 = vpop.f32.mrb[40].mxu1 }
 0x19e   : > { %v6701_v55 = vmax.f32 %v7479_v10, %v5255_v22  ;;  %v2198_v63 = vpop.f32.mrb[41].mxu0  ;;  %v6703_v53 = vpop.f32.mrb[41].mxu1 }
 0x19f   : > { %v6708_v26 = vmax.f32 %v7480_v25, %v2198_v63  ;;  %v5256_v15 = vpop.f32.mrb[42].mxu0  ;;  %v6710_v17 = vpop.f32.mrb[42].mxu1  ;;  %v7485_v63 = vmax.f32 %v6506_v46, %v6508_v47 }
 0x1a0   : > { %v6717_v2 = vmax.f32 %v7481_v0, %v5256_v15  ;;  %v2201_v3 = vpop.f32.mrb[43].mxu0  ;;  %v6719_v22 = vpop.f32.mrb[43].mxu1  ;;  %v7483_v0 = vmax.f32 %v6492_v38, %v6494_v39 }
 0x1a1   : > { %v6726_v6 = vmax.f32 %v7482_v29, %v2201_v3 }
 0x1a5   : > { %v5259_v31 = vpop.f32.mrb[44].mxu0  ;;  %v6732_v32 = vpop.f32.mrb[44].mxu1 }
 0x1a6   : > { %v6737_v15 = vmax.f32 %v7483_v0, %v5259_v31  ;;  %v2214_v10 = vpop.f32.mrb[45].mxu0  ;;  %v6739_v11 = vpop.f32.mrb[45].mxu1 }
 0x1a7   : > { %v6744_v36 = vmax.f32 %v7484_v35, %v2214_v10  ;;  %v5260_v3 = vpop.f32.mrb[46].mxu0  ;;  %v6746_v29 = vpop.f32.mrb[46].mxu1  ;;  %v7489_v10 = vmax.f32 %v6538_v7, %v6540_v8 }
 0x1a8   : > { %v6753_v38 = vmax.f32 %v7485_v63, %v5260_v3  ;;  %v2217_v39 = vpop.f32.mrb[47].mxu0  ;;  %v6755_v31 = vpop.f32.mrb[47].mxu1  ;;  %v7487_v63 = vmax.f32 %v6524_v59, %v6526_v60 }
 0x1a9   : > { %v6762_v42 = vmax.f32 %v7486_v41, %v2217_v39 }
 0x1ad   : > { %v5263_v46 = vpop.f32.mrb[48].mxu0  ;;  %v6768_v47 = vpop.f32.mrb[48].mxu1 }
 0x1ae   : > { %v6773_v3 = vmax.f32 %v7487_v63, %v5263_v46  ;;  %v2230_v0 = vpop.f32.mrb[49].mxu0  ;;  %v6775_v25 = vpop.f32.mrb[49].mxu1 }
 0x1af   : > { %v6780_v52 = vmax.f32 %v7488_v51, %v2230_v0  ;;  %v5264_v39 = vpop.f32.mrb[50].mxu0  ;;  %v6782_v41 = vpop.f32.mrb[50].mxu1  ;;  %v7494_v0 = vmax.f32 %v6564_v50, %v6566_v44 }
 0x1b0   : > { %v6789_v59 = vmax.f32 %v7489_v10, %v5264_v39  ;;  %v2233_v60 = vpop.f32.mrb[51].mxu0  ;;  %v6791_v46 = vpop.f32.mrb[51].mxu1  ;;  %v7491_v10 = vmax.f32 %v6552_v48, %v6554_v49 }
 0x1b1   : > { %v6798_v19 = vmax.f32 %v7490_v5, %v2233_v60 }
 0x1b5   : > { %v5267_v7 = vpop.f32.mrb[52].mxu0  ;;  %v6804_v8 = vpop.f32.mrb[52].mxu1 }
 0x1b6   : > { %v6809_v39 = vmax.f32 %v7491_v10, %v5267_v7  ;;  %v2246_v63 = vpop.f32.mrb[53].mxu0  ;;  %v6811_v35 = vpop.f32.mrb[53].mxu1 }
 0x1b7   : > { %v6816_v43 = vmax.f32 %v7492_v33, %v2246_v63  ;;  %v5268_v60 = vpop.f32.mrb[54].mxu0  ;;  %v6818_v5 = vpop.f32.mrb[54].mxu1 }
 0x1b8   : > { %7493 = vst [vmem:[#allocation15_spill] sm:$0xff] %v6818_v5  ;;  %v6825_v48 = vmax.f32 %v7494_v0, %v5268_v60  ;;  %v2249_v49 = vpop.f32.mrb[55].mxu0  ;;  %v6827_v7 = vpop.f32.mrb[55].mxu1  ;;  %v7500_v0 = vmax.f32 %v6576_v40, %v6578_v37 }
 0x1b9   : > { %7496 = vst [vmem:[#allocation17_spill] sm:$0xff] %v6827_v7  ;;  %v6834_v9 = vmax.f32 %v7497_v4, %v2249_v49  ;;  %v7506_v7 = vld [vmem:[#allocation4_spill] sm:$0xff] }
 0x1ba   : > { %7495 = vst [vmem:[#allocation16_spill] sm:$0xff] %v6825_v48 }
 0x1bb   : > { %7498 = vst [vmem:[#allocation18_spill] sm:$0xff] %v6834_v9  ;;  %v7507_v9 = vld [vmem:[#allocation5_spill] sm:$0xff] }
 0x1bc   : > { %v7508_v5 = vmax.f32 %v7506_v7, %v7507_v9  ;;  %v7515_v9 = vld [vmem:[#allocation8_spill] sm:$0xff] }
 0x1bd   : > { %v5271_v50 = vpop.f32.mrb[56].mxu0  ;;  %v6840_v44 = vpop.f32.mrb[56].mxu1 }
 0x1be   : > { %7499 = vst [vmem:[#allocation19_spill] sm:$0xff] %v6840_v44  ;;  %v6845_v60 = vmax.f32 %v7500_v0, %v5271_v50  ;;  %v2262_v10 = vpop.f32.mrb[57].mxu0  ;;  %v6847_v51 = vpop.f32.mrb[57].mxu1 }
 0x1bf   : > { %7502 = vst [vmem:[#allocation21_spill] sm:$0xff] %v6847_v51  ;;  %v6852_v49 = vmax.f32 %v7504_v24, %v2262_v10  ;;  %v5272_v4 = vpop.f32.mrb[58].mxu0  ;;  %v6854_v63 = vpop.f32.mrb[58].mxu1  ;;  %v7512_v10 = vld [vmem:[#allocation7_spill] sm:$0xff] }
 0x1c0   : > { %7501 = vst [vmem:[#allocation20_spill] sm:$0xff] %v6845_v60  ;;  %7505 = vst [vmem:[#allocation3_spill] sm:$0xff] %v6854_v63  ;;  %v6861_v37 = vmax.f32 %v7508_v5, %v5272_v4  ;;  %v2265_v40 = vpop.f32.mrb[59].mxu0  ;;  %v6863_v50 = vpop.f32.mrb[59].mxu1  ;;  %v7513_v45 = vmax.f32 %v7511_v34, %v7512_v10  ;;  %v7516_v4 = vld [vmem:[#allocation9_spill] sm:$0xff]  ;;  %v7519_v34 = vld [vmem:[#allocation10_spill] sm:$0xff] }
 0x1c1   : > { %7510 = vst [vmem:[#allocation5_spill] sm:$0xff] %v6863_v50  ;;  %v7517_v44 = vmax.f32 %v7515_v9, %v7516_v4  ;;  %v7522_v50 = vld [vmem:[#allocation12_spill] sm:$0xff] }
 0x1c2   : > { %7509 = vst [vmem:[#allocation4_spill] sm:$0xff] %v6861_v37  ;;  %v6870_v24 = vmax.f32 %v7513_v45, %v2265_v40  ;;  %v7520_v40 = vld [vmem:[#allocation11_spill] sm:$0xff] }
 0x1c3   : > { %v7521_v10 = vmax.f32 %v7519_v34, %v7520_v40 }
 0x1c4   : > { %7514 = vst [vmem:[#allocation6_spill] sm:$0xff] %v6870_v24  ;;  %v7523_v24 = vld [vmem:[#allocation13_spill] sm:$0xff] }
 0x1c5   : > { %v5275_v7 = vpop.f32.mrb[60].mxu0  ;;  %v6876_v5 = vpop.f32.mrb[60].mxu1  ;;  %v7524_v37 = vmax.f32 %v7522_v50, %v7523_v24 }
 0x1c6   : > { %v6881_v60 = vmax.f32 %v7517_v44, %v5275_v7  ;;  %v2278_v0 = vpop.f32.mrb[61].mxu0  ;;  %v6883_v51 = vpop.f32.mrb[61].mxu1 }
 0x1c7   : > { %7518 = vst [vmem:[#allocation7_spill] sm:$0xff] %v6883_v51  ;;  %v6888_v45 = vmax.f32 %v7521_v10, %v2278_v0  ;;  %v5276_v48 = vpop.f32.mrb[62].mxu0  ;;  %v6890_v63 = vpop.f32.mrb[62].mxu1  ;;  %v7525_v0 = vld [vmem:[#allocation14_spill] sm:$0xff]  ;;  %v7529_v10 = vmax.f32 %v6645_v54, %v6638_v30 }
 0x1c8   : > { %v6897_v9 = vmax.f32 %v7524_v37, %v5276_v48  ;;  %v2281_v44 = vpop.f32.mrb[63].mxu0  ;;  %v6899_v7 = vpop.f32.mrb[63].mxu1  ;;  %v7526_v34 = vmax.f32 %v6618_v21, %v7525_v0  ;;  %v7527_v37 = vmax.f32 %v6629_v61, %v6624_v16  ;;  %v7528_v21 = vmax.f32 %v6636_v27, %v6631_v28 }
 0x1c9   : > { %v7530_v27 = vmax.f32 %v6654_v58, %v6647_v13  ;;  %v7532_v13 = vmax.f32 %v6672_v12, %v6667_v20  ;;  %v7534_v20 = vmax.f32 %v6690_v18, %v6683_v62  ;;  %v7536_v62 = vmax.f32 %v6708_v26, %v6703_v53 }
 0x1ca   : > { %v6906_v40 = vmax.f32 %v7526_v34, %v2281_v44  ;;  %v7538_v53 = vmax.f32 %v6726_v6, %v6719_v22  ;;  %v7540_v22 = vmax.f32 %v6744_v36, %v6739_v11  ;;  %v7542_v11 = vmax.f32 %v6762_v42, %v6755_v31 }
 0x1cb   : > { %v7544_v31 = vmax.f32 %v6780_v52, %v6775_v25  ;;  %v7548_v25 = vmax.f32 %v6798_v19, %v6791_v46  ;;  %v7554_v46 = vmax.f32 %v6816_v43, %v6811_v35  ;;  %v7560_v35 = vld [vmem:[#allocation18_spill] sm:$0xff]  ;;  %v7561_v43 = vld [vmem:[#allocation17_spill] sm:$0xff] }
 0x1cd   : > { %v5339_v50 = vpop.f32.mrb[64].mxu0  ;;  %v6912_v48 = vpop.f32.mrb[64].mxu1 }
 0x1ce   : > { %v6917_v24 = vmax.f32 %v7527_v37, %v5339_v50  ;;  %v2874_v4 = vpop.f32.mrb[65].mxu0  ;;  %v6919_v51 = vpop.f32.mrb[65].mxu1 }
 0x1cf   : > { %v6924_v44 = vmax.f32 %v7528_v21, %v2874_v4  ;;  %v5340_v0 = vpop.f32.mrb[66].mxu0  ;;  %v6926_v34 = vpop.f32.mrb[66].mxu1  ;;  %v7533_v4 = vmax.f32 %v6681_v14, %v6674_v57 }
 0x1d0   : > { %v6933_v61 = vmax.f32 %v7529_v10, %v5340_v0  ;;  %v2877_v16 = vpop.f32.mrb[67].mxu0  ;;  %v6935_v50 = vpop.f32.mrb[67].mxu1  ;;  %v7531_v10 = vmax.f32 %v6665_v1, %v6660_v56 }
 0x1d1   : > { %v6942_v28 = vmax.f32 %v7530_v27, %v2877_v16 }
 0x1d5   : > { %v5343_v30 = vpop.f32.mrb[68].mxu0  ;;  %v6948_v54 = vpop.f32.mrb[68].mxu1 }
 0x1d6   : > { %v6953_v0 = vmax.f32 %v7531_v10, %v5343_v30  ;;  %v2890_v37 = vpop.f32.mrb[69].mxu0  ;;  %v6955_v33 = vpop.f32.mrb[69].mxu1 }
 0x1d7   : > { %v6960_v58 = vmax.f32 %v7532_v13, %v2890_v37  ;;  %v5344_v16 = vpop.f32.mrb[70].mxu0  ;;  %v6962_v27 = vpop.f32.mrb[70].mxu1  ;;  %v7537_v37 = vmax.f32 %v6717_v2, %v6710_v17 }
 0x1d8   : > { %v6969_v56 = vmax.f32 %v7533_v4, %v5344_v16  ;;  %v2893_v1 = vpop.f32.mrb[71].mxu0  ;;  %v6971_v30 = vpop.f32.mrb[71].mxu1  ;;  %v7535_v4 = vmax.f32 %v6701_v55, %v6696_v23 }
 0x1d9   : > { %v6978_v12 = vmax.f32 %v7534_v20, %v2893_v1 }
 0x1dd   : > { %v5347_v57 = vpop.f32.mrb[72].mxu0  ;;  %v6984_v14 = vpop.f32.mrb[72].mxu1 }
 0x1de   : > { %v6989_v16 = vmax.f32 %v7535_v4, %v5347_v57  ;;  %v2906_v10 = vpop.f32.mrb[73].mxu0  ;;  %v6991_v21 = vpop.f32.mrb[73].mxu1 }
 0x1df   : > { %v6996_v18 = vmax.f32 %v7536_v62, %v2906_v10  ;;  %v5348_v1 = vpop.f32.mrb[74].mxu0  ;;  %v6998_v20 = vpop.f32.mrb[74].mxu1  ;;  %v7541_v10 = vmax.f32 %v6753_v38, %v6746_v29 }
 0x1e0   : > { %v7005_v23 = vmax.f32 %v7537_v37, %v5348_v1  ;;  %v2909_v55 = vpop.f32.mrb[75].mxu0  ;;  %v7007_v57 = vpop.f32.mrb[75].mxu1  ;;  %v7539_v37 = vmax.f32 %v6737_v15, %v6732_v32 }
 0x1e1   : > { %v7014_v26 = vmax.f32 %v7538_v53, %v2909_v55 }
 0x1e5   : > { %v5351_v17 = vpop.f32.mrb[76].mxu0  ;;  %v7020_v2 = vpop.f32.mrb[76].mxu1 }
 0x1e6   : > { %v7025_v1 = vmax.f32 %v7539_v37, %v5351_v17  ;;  %v2922_v4 = vpop.f32.mrb[77].mxu0  ;;  %v7027_v13 = vpop.f32.mrb[77].mxu1 }
 0x1e7   : > { %v7032_v6 = vmax.f32 %v7540_v22, %v2922_v4  ;;  %v5352_v55 = vpop.f32.mrb[78].mxu0  ;;  %v7034_v53 = vpop.f32.mrb[78].mxu1  ;;  %v7546_v4 = vmax.f32 %v6789_v59, %v6782_v41 }
 0x1e8   : > { %v7041_v32 = vmax.f32 %v7541_v10, %v5352_v55  ;;  %v2925_v15 = vpop.f32.mrb[79].mxu0  ;;  %v7043_v17 = vpop.f32.mrb[79].mxu1  ;;  %v7543_v10 = vmax.f32 %v6773_v3, %v6768_v47 }
 0x1e9   : > { %v7050_v36 = vmax.f32 %v7542_v11, %v2925_v15 }
 0x1ed   : > { %v5355_v29 = vpop.f32.mrb[80].mxu0  ;;  %v7056_v38 = vpop.f32.mrb[80].mxu1 }
 0x1ee   : > { %v7061_v55 = vmax.f32 %v7543_v10, %v5355_v29  ;;  %v2938_v37 = vpop.f32.mrb[81].mxu0  ;;  %v7063_v62 = vpop.f32.mrb[81].mxu1 }
 0x1ef   : > { %v7068_v42 = vmax.f32 %v7544_v31, %v2938_v37  ;;  %v5356_v15 = vpop.f32.mrb[82].mxu0  ;;  %v7070_v11 = vpop.f32.mrb[82].mxu1  ;;  %v7556_v37 = vld [vmem:[#allocation16_spill] sm:$0xff] }
 0x1f0   : > { %7545 = vst [vmem:[#allocation8_spill] sm:$0xff] %v7070_v11  ;;  %v7077_v47 = vmax.f32 %v7546_v4, %v5356_v15  ;;  %v2941_v3 = vpop.f32.mrb[83].mxu0  ;;  %v7079_v29 = vpop.f32.mrb[83].mxu1  ;;  %v7551_v4 = vmax.f32 %v6809_v39, %v6804_v8 }
 0x1f1   : > { %7547 = vst [vmem:[#allocation9_spill] sm:$0xff] %v7079_v29  ;;  %v7086_v52 = vmax.f32 %v7548_v25, %v2941_v3  ;;  %v7557_v29 = vld [vmem:[#allocation15_spill] sm:$0xff] }
 0x1f3   : > { %7549 = vst [vmem:[#allocation10_spill] sm:$0xff] %v7086_v52  ;;  %v7558_v52 = vmax.f32 %v7556_v37, %v7557_v29  ;;  %v7565_v37 = vld [vmem:[#allocation20_spill] sm:$0xff] }
 0x1f5   : > { %v5359_v41 = vpop.f32.mrb[84].mxu0  ;;  %v7092_v59 = vpop.f32.mrb[84].mxu1 }
 0x1f6   : > { %7550 = vst [vmem:[#allocation11_spill] sm:$0xff] %v7092_v59  ;;  %v7097_v15 = vmax.f32 %v7551_v4, %v5359_v41  ;;  %v2954_v10 = vpop.f32.mrb[85].mxu0  ;;  %v7099_v22 = vpop.f32.mrb[85].mxu1 }
 0x1f7   : > { %7553 = vst [vmem:[#allocation13_spill] sm:$0xff] %v7099_v22  ;;  %v7104_v19 = vmax.f32 %v7554_v46, %v2954_v10  ;;  %v5360_v3 = vpop.f32.mrb[86].mxu0  ;;  %v7106_v25 = vpop.f32.mrb[86].mxu1  ;;  %v7562_v10 = vmax.f32 %v7560_v35, %v7561_v43 }
 0x1f8   : > { %7552 = vst [vmem:[#allocation12_spill] sm:$0xff] %v7097_v15  ;;  %7555 = vst [vmem:[#allocation14_spill] sm:$0xff] %v7106_v25  ;;  %v7113_v8 = vmax.f32 %v7558_v52, %v5360_v3  ;;  %v2957_v39 = vpop.f32.mrb[87].mxu0  ;;  %v7115_v41 = vpop.f32.mrb[87].mxu1  ;;  %v7566_v3 = vld [vmem:[#allocation19_spill] sm:$0xff] }
 0x1f9   : > { %7559 = vst [vmem:[#allocation16_spill] sm:$0xff] %v7115_v41  ;;  %v7122_v46 = vmax.f32 %v7562_v10, %v2957_v39  ;;  %v7567_v59 = vmax.f32 %v7565_v37, %v7566_v3  ;;  %v7569_v39 = vld [vmem:[#allocation21_spill] sm:$0xff]  ;;  %v7571_v41 = vld [vmem:[#allocation4_spill] sm:$0xff] }
 0x1fa   : > { %v7570_v35 = vmax.f32 %v6852_v49, %v7569_v39  ;;  %v7575_v3 = vld [vmem:[#allocation5_spill] sm:$0xff] }
 0x1fb   : > { %7563 = vst [vmem:[#allocation15_spill] sm:$0xff] %v7122_v46  ;;  %v7572_v46 = vld [vmem:[#allocation3_spill] sm:$0xff] }
 0x1fc   : > { %v7573_v25 = vmax.f32 %v7571_v41, %v7572_v46 }
 0x1fd   : > { %v5363_v29 = vpop.f32.mrb[88].mxu0  ;;  %v7128_v52 = vpop.f32.mrb[88].mxu1 }
 0x1fe   : > { %7564 = vst [vmem:[#allocation18_spill] sm:$0xff] %v7128_v52  ;;  %v7133_v15 = vmax.f32 %v7567_v59, %v5363_v29  ;;  %v2970_v4 = vpop.f32.mrb[89].mxu0  ;;  %v7135_v22 = vpop.f32.mrb[89].mxu1 }
 0x1ff   : > { %7568 = vst [vmem:[#allocation17_spill] sm:$0xff] %v7135_v22  ;;  %v7140_v43 = vmax.f32 %v7570_v35, %v2970_v4  ;;  %v5364_v10 = vpop.f32.mrb[90].mxu0  ;;  %v7142_v11 = vpop.f32.mrb[90].mxu1  ;;  %v7574_v4 = vld [vmem:[#allocation6_spill] sm:$0xff] }
 0x200   : > { %v7149_v59 = vmax.f32 %v7573_v25, %v5364_v10  ;;  %v2973_v29 = vpop.f32.mrb[91].mxu0  ;;  %v7151_v37 = vpop.f32.mrb[91].mxu1  ;;  %v7576_v39 = vmax.f32 %v7574_v4, %v7575_v3  ;;  %v7577_v10 = vmax.f32 %v6881_v60, %v6876_v5  ;;  %v7583_v60 = vmax.f32 %v6897_v9, %v6890_v63 }
 0x202   : > { %v7158_v35 = vmax.f32 %v7576_v39, %v2973_v29  ;;  %v7579_v29 = vld [vmem:[#allocation7_spill] sm:$0xff] }
 0x203   : > { %v7580_v4 = vmax.f32 %v6888_v45, %v7579_v29 }
 0x205   : > { %v5367_v46 = vpop.f32.mrb[92].mxu0  ;;  %v7164_v25 = vpop.f32.mrb[92].mxu1 }
 0x206   : > { %v7169_v52 = vmax.f32 %v7577_v10, %v5367_v46  ;;  %v2986_v49 = vpop.f32.mrb[93].mxu0  ;;  %v7171_v22 = vpop.f32.mrb[93].mxu1 }
 0x207   : > { %7578 = vst [vmem:[#allocation20_spill] sm:$0xff] %v7171_v22  ;;  %v7176_v3 = vmax.f32 %v7580_v4, %v2986_v49  ;;  %v5368_v39 = vpop.f32.mrb[94].mxu0  ;;  %v7178_v31 = vpop.f32.mrb[94].mxu1  ;;  %v7586_v49 = vmax.f32 %v6906_v40, %v6899_v7  ;;  %v7208_v7 = vld [vmem:[%s7416_s2] ss:$0 sm:$0xff]  ;;  %v7589_v40 = vmax.f32 %v6924_v44, %v6919_v51 }
 0x208   : > { %7582 = vst [vmem:[#allocation21_spill] sm:$0xff] %v7178_v31  ;;  %v7187_v5 = vmax.f32 %v7583_v60, %v5368_v39  ;;  %v2989_v46 = vpop.f32.mrb[95].mxu0  ;;  %v7189_v10 = vpop.f32.mrb[95].mxu1  ;;  %v7588_v60 = vmax.f32 %v6917_v24, %v6912_v48 }
 0x209   : > { %7581 = vst [vmem:[#allocation19_spill] sm:$0xff] %v7176_v3  ;;  %7585 = vst [vmem:[#allocation3_spill] sm:$0xff] %v7189_v10  ;;  %v7196_v29 = vmax.f32 %v7586_v49, %v2989_v46  ;;  %v7590_v10 = vmax.f32 %v6933_v61, %v6926_v34 }
 0x20a   : > { %7584 = vst [vmem:[#allocation4_spill] sm:$0xff] %v7187_v5 }
 0x20b   : > { %7587 = vst [vmem:[#allocation6_spill] sm:$0xff] %v7196_v29  ;;  %v7591_v29 = vmax.f32 %v6942_v28, %v6935_v50 }
 0x20d   : > { %v5431_v9 = vpop.f32.mrb[96].mxu0  ;;  %v5477_v39 = vpop.f32.mrb[96].mxu1 }
 0x20e   : > { %v3711_v41 = vmax.f32 %v7588_v60, %v5431_v9  ;;  %v3582_v45 = vpop.f32.mrb[97].mxu0  ;;  %v3936_v22 = vpop.f32.mrb[97].mxu1 }
 0x20f   : > { %v3709_v46 = vmax.f32 %v7589_v40, %v3582_v45  ;;  %v5432_v49 = vpop.f32.mrb[98].mxu0  ;;  %v5478_v63 = vpop.f32.mrb[98].mxu1 }
 0x210   : > { %v4065_v4 = vmax.f32 %v3711_v41, %v5477_v39  ;;  %v3712_v48 = vmax.f32 %v7590_v10, %v5432_v49  ;;  %v3585_v24 = vpop.f32.mrb[99].mxu0  ;;  %v3939_v9 = vpop.f32.mrb[99].mxu1  ;;  %v7593_v39 = vmax.f32 %v6960_v58, %v6955_v33  ;;  %v7595_v33 = vmax.f32 %v6978_v12, %v6971_v30 }
 0x211   : > { %v4063_v60 = vmax.f32 %v3709_v46, %v3936_v22  ;;  %v3710_v31 = vmax.f32 %v7591_v29, %v3585_v24 }
 0x212   : > { %v4104_v5 = vadd.f32 %v7208_v7, %v4065_v4  ;;  %v4066_v3 = vmax.f32 %v3712_v48, %v5478_v63 }
 0x213   : > { %v4102_v51 = vadd.f32 %v7208_v7, %v4063_v60  ;;  %v4064_v44 = vmax.f32 %v3710_v31, %v3939_v9  ;;  %v7592_v31 = vmax.f32 %v6953_v0, %v6948_v54  ;;  %v7594_v54 = vmax.f32 %v6969_v56, %v6962_v27 }
 0x214   : > { %v4136_v45 = vmax.f32 %v4104_v5, 0.0  ;;  %v4105_v41 = vadd.f32 %v7208_v7, %v4066_v3 }
 0x215   : > { %v4134_v34 = vmax.f32 %v4102_v51, 0.0  ;;  %v4103_v61 = vadd.f32 %v7208_v7, %v4064_v44  ;;  %v5435_v50 = vpop.f32.mrb[100].mxu0  ;;  %v5481_v28 = vpop.f32.mrb[100].mxu1 }
 0x216   : > { %v4925_v22 = vpack.c.bf16 %v4136_v45, %v4136_v45  ;;  %v4137_v10 = vmax.f32 %v4105_v41, 0.0  ;;  %v3715_v5 = vmax.f32 %v7592_v31, %v5435_v50  ;;  %v3598_v3 = vpop.f32.mrb[101].mxu0  ;;  %v3952_v29 = vpop.f32.mrb[101].mxu1  ;;  %v7596_v31 = vmax.f32 %v6989_v16, %v6984_v14 }
 0x217   : > { %v4923_v4 = vpack.c.bf16 %v4134_v34, %v4134_v34  ;;  %v4135_v63 = vmax.f32 %v4103_v61, 0.0  ;;  %v3713_v40 = vmax.f32 %v7593_v39, %v3598_v3  ;;  %v5436_v46 = vpop.f32.mrb[102].mxu0  ;;  %v5482_v49 = vpop.f32.mrb[102].mxu1  ;;  %v7597_v39 = vmax.f32 %v6996_v18, %v6991_v21 }
 0x218   : > { %4297 = vst.msk [vmem:[%s7225_s26 + $0x8] sm:$0xf] %vm4294_vm2, %v4925_v22  ;;  %v4926_v48 = vpack.c.bf16 %v4137_v10, %v4137_v10  ;;  %v4069_v24 = vmax.f32 %v3715_v5, %v5481_v28  ;;  %v3716_v0 = vmax.f32 %v7594_v54, %v5436_v46  ;;  %v3601_v9 = vpop.f32.mrb[103].mxu0  ;;  %v3955_v60 = vpop.f32.mrb[103].mxu1  ;;  %v7598_v14 = vmax.f32 %v7005_v23, %v6998_v20 }
 0x219   : > { %4295 = vst.msk [vmem:[%s7225_s26] sm:$0xf] %vm4294_vm2, %v4923_v4  ;;  %v4924_v51 = vpack.c.bf16 %v4135_v63, %v4135_v63  ;;  %v4067_v44 = vmax.f32 %v3713_v40, %v3952_v29  ;;  %v3714_v58 = vmax.f32 %v7595_v33, %v3601_v9  ;;  %v7599_v21 = vmax.f32 %v7014_v26, %v7007_v57 }
 0x21a   : > { %4298 = vst.msk [vmem:[%s7225_s26 + $0xc] sm:$0xf] %vm4294_vm2, %v4926_v48  ;;  %v4108_v45 = vadd.f32 %v7208_v7, %v4069_v24  ;;  %v4070_v41 = vmax.f32 %v3716_v0, %v5482_v49 }
 0x21b   : > { %4296 = vst.msk [vmem:[%s7225_s26 + $0x4] sm:$0xf] %vm4294_vm2, %v4924_v51  ;;  %v4106_v27 = vadd.f32 %v7208_v7, %v4067_v44  ;;  %v4068_v56 = vmax.f32 %v3714_v58, %v3955_v60 }
 0x21c   : > { %v4140_v34 = vmax.f32 %v4108_v45, 0.0  ;;  %v4109_v61 = vadd.f32 %v7208_v7, %v4070_v41 }
 0x21d   : > { %v4138_v50 = vmax.f32 %v4106_v27, 0.0  ;;  %v4107_v28 = vadd.f32 %v7208_v7, %v4068_v56  ;;  %v5439_v22 = vpop.f32.mrb[104].mxu0  ;;  %v5485_v30 = vpop.f32.mrb[104].mxu1 }
 0x21e   : > { %v4929_v12 = vpack.c.bf16 %v4140_v34, %v4140_v34  ;;  %v4141_v10 = vmax.f32 %v4109_v61, 0.0  ;;  %v3719_v5 = vmax.f32 %v7596_v31, %v5439_v22  ;;  %v3614_v3 = vpop.f32.mrb[105].mxu0  ;;  %v3968_v29 = vpop.f32.mrb[105].mxu1  ;;  %v7600_v34 = vmax.f32 %v7025_v1, %v7020_v2 }
 0x21f   : > { %v4927_v4 = vpack.c.bf16 %v4138_v50, %v4138_v50  ;;  %v4139_v63 = vmax.f32 %v4107_v28, 0.0  ;;  %v3717_v40 = vmax.f32 %v7597_v39, %v3614_v3  ;;  %v5440_v46 = vpop.f32.mrb[106].mxu0  ;;  %v5486_v49 = vpop.f32.mrb[106].mxu1  ;;  %v7602_v2 = vmax.f32 %v7041_v32, %v7034_v53 }
 0x220   : > { %4301 = vst.msk [vmem:[%s7225_s26 + $0x18] sm:$0xf] %vm4294_vm2, %v4929_v12  ;;  %v4930_v48 = vpack.c.bf16 %v4141_v10, %v4141_v10  ;;  %v4073_v24 = vmax.f32 %v3719_v5, %v5485_v30  ;;  %v3720_v16 = vmax.f32 %v7598_v14, %v5440_v46  ;;  %v3617_v54 = vpop.f32.mrb[107].mxu0  ;;  %v3971_v0 = vpop.f32.mrb[107].mxu1  ;;  %v7601_v12 = vmax.f32 %v7032_v6, %v7027_v13 }
 0x221   : > { %4299 = vst.msk [vmem:[%s7225_s26 + $0x10] sm:$0xf] %vm4294_vm2, %v4927_v4  ;;  %v4928_v9 = vpack.c.bf16 %v4139_v63, %v4139_v63  ;;  %v4071_v60 = vmax.f32 %v3717_v40, %v3968_v29  ;;  %v3718_v18 = vmax.f32 %v7599_v21, %v3617_v54  ;;  %v7603_v13 = vmax.f32 %v7050_v36, %v7043_v17 }
 0x222   : > { %4302 = vst.msk [vmem:[%s7225_s26 + $0x1c] sm:$0xf] %vm4294_vm2, %v4930_v48  ;;  %v4112_v51 = vadd.f32 %v7208_v7, %v4073_v24  ;;  %v4074_v44 = vmax.f32 %v3720_v16, %v5486_v49 }
 0x223   : > { %4300 = vst.msk [vmem:[%s7225_s26 + $0x14] sm:$0xf] %vm4294_vm2, %v4928_v9  ;;  %v4110_v20 = vadd.f32 %v7208_v7, %v4071_v60  ;;  %v4072_v23 = vmax.f32 %v3718_v18, %v3971_v0  ;;  %v7604_v9 = vmax.f32 %v7061_v55, %v7056_v38 }
 0x224   : > { %v4144_v33 = vmax.f32 %v4112_v51, 0.0  ;;  %v4113_v58 = vadd.f32 %v7208_v7, %v4074_v44 }
 0x225   : > { %v4142_v45 = vmax.f32 %v4110_v20, 0.0  ;;  %v4111_v41 = vadd.f32 %v7208_v7, %v4072_v23  ;;  %v5443_v27 = vpop.f32.mrb[108].mxu0  ;;  %v5489_v57 = vpop.f32.mrb[108].mxu1  ;;  %v7605_v20 = vmax.f32 %v7068_v42, %v7063_v62  ;;  %v7609_v62 = vld [vmem:[#allocation9_spill] sm:$0xff] }
 0x226   : > { %v4933_v26 = vpack.c.bf16 %v4144_v33, %v4144_v33  ;;  %v4145_v56 = vmax.f32 %v4113_v58, 0.0  ;;  %v3723_v61 = vmax.f32 %v7600_v34, %v5443_v27  ;;  %v3630_v50 = vpop.f32.mrb[109].mxu0  ;;  %v3984_v28 = vpop.f32.mrb[109].mxu1  ;;  %v7606_v27 = vld [vmem:[#allocation8_spill] sm:$0xff] }
 0x227   : > { %v4931_v22 = vpack.c.bf16 %v4142_v45, %v4142_v45  ;;  %v4143_v30 = vmax.f32 %v4111_v41, 0.0  ;;  %v3721_v10 = vmax.f32 %v7601_v12, %v3630_v50  ;;  %v5444_v31 = vpop.f32.mrb[110].mxu0  ;;  %v5490_v5 = vpop.f32.mrb[110].mxu1  ;;  %v7607_v38 = vmax.f32 %v7077_v47, %v7606_v27 }
 0x228   : > { %4305 = vst.msk [vmem:[%s7225_s26 + $0x28] sm:$0xf] %vm4294_vm2, %v4933_v26  ;;  %v4934_v3 = vpack.c.bf16 %v4145_v56, %v4145_v56  ;;  %v4077_v29 = vmax.f32 %v3723_v61, %v5489_v57  ;;  %v3724_v1 = vmax.f32 %v7602_v2, %v5444_v31  ;;  %v3633_v4 = vpop.f32.mrb[111].mxu0  ;;  %v3987_v63 = vpop.f32.mrb[111].mxu1  ;;  %v7608_v61 = vld [vmem:[#allocation10_spill] sm:$0xff] }
 0x229   : > { %4303 = vst.msk [vmem:[%s7225_s26 + $0x20] sm:$0xf] %vm4294_vm2, %v4931_v22  ;;  %v4932_v39 = vpack.c.bf16 %v4143_v30, %v4143_v30  ;;  %v4075_v40 = vmax.f32 %v3721_v10, %v3984_v28  ;;  %v3722_v6 = vmax.f32 %v7603_v13, %v3633_v4  ;;  %v7610_v42 = vmax.f32 %v7608_v61, %v7609_v62  ;;  %v7611_v4 = vld [vmem:[#allocation12_spill] sm:$0xff] }
 0x22a   : > { %4306 = vst.msk [vmem:[%s7225_s26 + $0x2c] sm:$0xf] %vm4294_vm2, %v4934_v3  ;;  %v4116_v46 = vadd.f32 %v7208_v7, %v4077_v29  ;;  %v4078_v49 = vmax.f32 %v3724_v1, %v5490_v5 }
 0x22b   : > { %4304 = vst.msk [vmem:[%s7225_s26 + $0x24] sm:$0xf] %vm4294_vm2, %v4932_v39  ;;  %v4114_v53 = vadd.f32 %v7208_v7, %v4075_v40  ;;  %v4076_v32 = vmax.f32 %v3722_v6, %v3987_v63  ;;  %v7612_v63 = vld [vmem:[#allocation11_spill] sm:$0xff] }
 0x22c   : > { %v4148_v48 = vmax.f32 %v4116_v46, 0.0  ;;  %v4117_v24 = vadd.f32 %v7208_v7, %v4078_v49  ;;  %v7613_v39 = vmax.f32 %v7611_v4, %v7612_v63 }
 0x22d   : > { %v4146_v14 = vmax.f32 %v4114_v53, 0.0  ;;  %v4115_v16 = vadd.f32 %v7208_v7, %v4076_v32  ;;  %v5447_v54 = vpop.f32.mrb[112].mxu0  ;;  %v5493_v17 = vpop.f32.mrb[112].mxu1  ;;  %v7614_v53 = vld [vmem:[#allocation13_spill] sm:$0xff] }
 0x22e   : > { %v4937_v36 = vpack.c.bf16 %v4148_v48, %v4148_v48  ;;  %v4149_v0 = vmax.f32 %v4117_v24, 0.0  ;;  %v3727_v60 = vmax.f32 %v7604_v9, %v5447_v54  ;;  %v3646_v21 = vpop.f32.mrb[113].mxu0  ;;  %v4000_v18 = vpop.f32.mrb[113].mxu1  ;;  %v7615_v32 = vmax.f32 %v7104_v19, %v7614_v53  ;;  %v7619_v19 = vld [vmem:[#allocation16_spill] sm:$0xff] }
 0x22f   : > { %v4935_v51 = vpack.c.bf16 %v4146_v14, %v4146_v14  ;;  %v4147_v44 = vmax.f32 %v4115_v16, 0.0  ;;  %v3725_v23 = vmax.f32 %v7605_v20, %v3646_v21  ;;  %v5448_v33 = vpop.f32.mrb[114].mxu0  ;;  %v5494_v58 = vpop.f32.mrb[114].mxu1 }
 0x230   : > { %4309 = vst.msk [vmem:[%s7225_s26 + $0x38] sm:$0xf] %vm4294_vm2, %v4937_v36  ;;  %v4938_v45 = vpack.c.bf16 %v4149_v0, %v4149_v0  ;;  %v4081_v41 = vmax.f32 %v3727_v60, %v5493_v17  ;;  %v3728_v55 = vmax.f32 %v7607_v38, %v5448_v33  ;;  %v3649_v57 = vpop.f32.mrb[115].mxu0  ;;  %v4003_v26 = vpop.f32.mrb[115].mxu1  ;;  %v7616_v17 = vld [vmem:[#allocation14_spill] sm:$0xff] }
 0x231   : > { %4307 = vst.msk [vmem:[%s7225_s26 + $0x30] sm:$0xf] %vm4294_vm2, %v4935_v51  ;;  %v4936_v56 = vpack.c.bf16 %v4147_v44, %v4147_v44  ;;  %v4079_v34 = vmax.f32 %v3725_v23, %v4000_v18  ;;  %v3726_v50 = vmax.f32 %v7610_v42, %v3649_v57  ;;  %v7617_v36 = vmax.f32 %v7113_v8, %v7616_v17  ;;  %v7618_v51 = vld [vmem:[#allocation15_spill] sm:$0xff] }
 0x232   : > { %4310 = vst.msk [vmem:[%s7225_s26 + $0x3c] sm:$0xf] %vm4294_vm2, %v4938_v45  ;;  %v4120_v28 = vadd.f32 %v7208_v7, %v4081_v41  ;;  %v4082_v22 = vmax.f32 %v3728_v55, %v5494_v58  ;;  %v7620_v44 = vmax.f32 %v7618_v51, %v7619_v19 }
 0x233   : > { %4308 = vst.msk [vmem:[%s7225_s26 + $0x34] sm:$0xf] %vm4294_vm2, %v4936_v56  ;;  %v4118_v47 = vadd.f32 %v7208_v7, %v4079_v34  ;;  %v4080_v30 = vmax.f32 %v3726_v50, %v4003_v26  ;;  %v7621_v34 = vld [vmem:[#allocation18_spill] sm:$0xff] }
 0x234   : > { %v4152_v12 = vmax.f32 %v4120_v28, 0.0  ;;  %v4121_v10 = vadd.f32 %v7208_v7, %v4082_v22  ;;  %v7622_v61 = vmax.f32 %v7133_v15, %v7621_v34  ;;  %v7625_v15 = vmax.f32 %v7149_v59, %v7142_v11 }
 0x235   : > { %v4150_v31 = vmax.f32 %v4118_v47, 0.0  ;;  %v4119_v5 = vadd.f32 %v7208_v7, %v4080_v30  ;;  %v5451_v3 = vpop.f32.mrb[116].mxu0  ;;  %v5497_v29 = vpop.f32.mrb[116].mxu1  ;;  %v7623_v47 = vld [vmem:[#allocation17_spill] sm:$0xff] }
 0x236   : > { %v4941_v2 = vpack.c.bf16 %v4152_v12, %v4152_v12  ;;  %v4153_v1 = vmax.f32 %v4121_v10, 0.0  ;;  %v3731_v40 = vmax.f32 %v7613_v39, %v5451_v3  ;;  %v3662_v13 = vpop.f32.mrb[117].mxu0  ;;  %v4016_v6 = vpop.f32.mrb[117].mxu1  ;;  %v7624_v30 = vmax.f32 %v7140_v43, %v7623_v47 }
 0x237   : > { %v4939_v46 = vpack.c.bf16 %v4150_v31, %v4150_v31  ;;  %v4151_v49 = vmax.f32 %v4119_v5, 0.0  ;;  %v3729_v48 = vmax.f32 %v7615_v32, %v3662_v13  ;;  %v5452_v24 = vpop.f32.mrb[118].mxu0  ;;  %v5498_v14 = vpop.f32.mrb[118].mxu1  ;;  %v7626_v43 = vmax.f32 %v7158_v35, %v7151_v37 }
 0x238   : > { %4313 = vst.msk [vmem:[%s7225_s26 + $0x48] sm:$0xf] %vm4294_vm2, %v4941_v2  ;;  %v4942_v16 = vpack.c.bf16 %v4153_v1, %v4153_v1  ;;  %v4085_v54 = vmax.f32 %v3731_v40, %v5497_v29  ;;  %v3732_v0 = vmax.f32 %v7617_v36, %v5452_v24  ;;  %v3665_v9 = vpop.f32.mrb[119].mxu0  ;;  %v4019_v60 = vpop.f32.mrb[119].mxu1  ;;  %v7627_v24 = vmax.f32 %v7169_v52, %v7164_v25 }
 0x239   : > { %4311 = vst.msk [vmem:[%s7225_s26 + $0x40] sm:$0xf] %vm4294_vm2, %v4939_v46  ;;  %v4940_v21 = vpack.c.bf16 %v4151_v49, %v4151_v49  ;;  %v4083_v18 = vmax.f32 %v3729_v48, %v4016_v6  ;;  %v3730_v20 = vmax.f32 %v7620_v44, %v3665_v9  ;;  %v7629_v9 = vld [vmem:[#allocation20_spill] sm:$0xff] }
 0x23a   : > { %4314 = vst.msk [vmem:[%s7225_s26 + $0x4c] sm:$0xf] %vm4294_vm2, %v4942_v16  ;;  %v4124_v23 = vadd.f32 %v7208_v7, %v4085_v54  ;;  %v4086_v33 = vmax.f32 %v3732_v0, %v5498_v14  ;;  %v7628_v0 = vld [vmem:[#allocation19_spill] sm:$0xff] }
 0x23b   : > { %4312 = vst.msk [vmem:[%s7225_s26 + $0x44] sm:$0xf] %vm4294_vm2, %v4940_v21  ;;  %v4122_v8 = vadd.f32 %v7208_v7, %v4083_v18  ;;  %v4084_v58 = vmax.f32 %v3730_v20, %v4019_v60  ;;  %v7630_v60 = vmax.f32 %v7628_v0, %v7629_v9  ;;  %v7631_v20 = vld [vmem:[#allocation4_spill] sm:$0xff] }
 0x23c   : > { %v4156_v45 = vmax.f32 %v4124_v23, 0.0  ;;  %v4125_v41 = vadd.f32 %v7208_v7, %v4086_v33  ;;  %v7632_v23 = vld [vmem:[#allocation21_spill] sm:$0xff] }
 0x23d   : > { %v4154_v27 = vmax.f32 %v4122_v8, 0.0  ;;  %v4123_v38 = vadd.f32 %v7208_v7, %v4084_v58  ;;  %v5455_v55 = vpop.f32.mrb[120].mxu0  ;;  %v5501_v57 = vpop.f32.mrb[120].mxu1  ;;  %v7633_v52 = vmax.f32 %v7631_v20, %v7632_v23 }
 0x23e   : > { %v4945_v26 = vpack.c.bf16 %v4156_v45, %v4156_v45  ;;  %v4157_v56 = vmax.f32 %v4125_v41, 0.0  ;;  %v3735_v62 = vmax.f32 %v7622_v61, %v5455_v55  ;;  %v3678_v42 = vpop.f32.mrb[121].mxu0  ;;  %v4032_v50 = vpop.f32.mrb[121].mxu1  ;;  %v7634_v41 = vld [vmem:[#allocation6_spill] sm:$0xff] }
 0x23f   : > { %v4943_v28 = vpack.c.bf16 %v4154_v27, %v4154_v27  ;;  %v4155_v22 = vmax.f32 %v4123_v38, 0.0  ;;  %v3733_v12 = vmax.f32 %v7624_v30, %v3678_v42  ;;  %v5456_v10 = vpop.f32.mrb[122].mxu0  ;;  %v5502_v31 = vpop.f32.mrb[122].mxu1  ;;  %v7635_v27 = vld [vmem:[#allocation3_spill] sm:$0xff] }
 0x240   : > { %4317 = vst.msk [vmem:[%s7225_s26 + $0x58] sm:$0xf] %vm4294_vm2, %v4945_v26  ;;  %v4946_v5 = vpack.c.bf16 %v4157_v56, %v4157_v56  ;;  %v4089_v3 = vmax.f32 %v3735_v62, %v5501_v57  ;;  %v3736_v29 = vmax.f32 %v7625_v15, %v5456_v10  ;;  %v3681_v2 = vpop.f32.mrb[123].mxu0  ;;  %v4035_v1 = vpop.f32.mrb[123].mxu1  ;;  %v7636_v38 = vmax.f32 %v7634_v41, %v7635_v27 }
 0x241   : > { %4315 = vst.msk [vmem:[%s7225_s26 + $0x50] sm:$0xf] %vm4294_vm2, %v4943_v28  ;;  %v4944_v4 = vpack.c.bf16 %v4155_v22, %v4155_v22  ;;  %v4087_v63 = vmax.f32 %v3733_v12, %v4032_v50  ;;  %v3734_v39 = vmax.f32 %v7626_v43, %v3681_v2 }
 0x242   : > { %4318 = vst.msk [vmem:[%s7225_s26 + $0x5c] sm:$0xf] %vm4294_vm2, %v4946_v5  ;;  %v4128_v40 = vadd.f32 %v7208_v7, %v4089_v3  ;;  %v4090_v13 = vmax.f32 %v3736_v29, %v5502_v31 }
 0x243   : > { %4316 = vst.msk [vmem:[%s7225_s26 + $0x54] sm:$0xf] %vm4294_vm2, %v4944_v4  ;;  %v4126_v11 = vadd.f32 %v7208_v7, %v4087_v63  ;;  %v4088_v59 = vmax.f32 %v3734_v39, %v4035_v1 }
 0x244   : > { %v4160_v6 = vmax.f32 %v4128_v40, 0.0  ;;  %v4129_v46 = vadd.f32 %v7208_v7, %v4090_v13 }
 0x245   : > { %v4158_v49 = vmax.f32 %v4126_v11, 0.0  ;;  %v4127_v53 = vadd.f32 %v7208_v7, %v4088_v59  ;;  %v5459_v32 = vpop.f32.mrb[124].mxu0  ;;  %v5505_v37 = vpop.f32.mrb[124].mxu1 }
 0x246   : > { %v4949_v35 = vpack.c.bf16 %v4160_v6, %v4160_v6  ;;  %v4161_v48 = vmax.f32 %v4129_v46, 0.0  ;;  %v3739_v14 = vmax.f32 %v7627_v24, %v5459_v32  ;;  %v3694_v16 = vpop.f32.mrb[125].mxu0  ;;  %v4048_v54 = vpop.f32.mrb[125].mxu1 }
 0x247   : > { %v4947_v17 = vpack.c.bf16 %v4158_v49, %v4158_v49  ;;  %v4159_v36 = vmax.f32 %v4127_v53, 0.0  ;;  %v3737_v21 = vmax.f32 %v7630_v60, %v3694_v16  ;;  %v5460_v18 = vpop.f32.mrb[126].mxu0  ;;  %v5506_v51 = vpop.f32.mrb[126].mxu1 }
 0x248   : > { %4321 = vst.msk [vmem:[%s7225_s26 + $0x68] sm:$0xf] %vm4294_vm2, %v4949_v35  ;;  %v4950_v19 = vpack.c.bf16 %v4161_v48, %v4161_v48  ;;  %v4093_v44 = vmax.f32 %v3739_v14, %v5505_v37  ;;  %v3740_v25 = vmax.f32 %v7633_v52, %v5460_v18  ;;  %v3697_v33 = vpop.f32.mrb[127].mxu0  ;;  %v4051_v8 = vpop.f32.mrb[127].mxu1 }
 0x249   : > { %4319 = vst.msk [vmem:[%s7225_s26 + $0x60] sm:$0xf] %vm4294_vm2, %v4947_v17  ;;  %v4948_v58 = vpack.c.bf16 %v4159_v36, %v4159_v36  ;;  %v4091_v45 = vmax.f32 %v3737_v21, %v4048_v54  ;;  %v3738_v55 = vmax.f32 %v7636_v38, %v3697_v33 }
 0x24a   : > { %4322 = vst.msk [vmem:[%s7225_s26 + $0x6c] sm:$0xf] %vm4294_vm2, %v4950_v19  ;;  %v4132_v57 = vadd.f32 %v7208_v7, %v4093_v44  ;;  %v4094_v26 = vmax.f32 %v3740_v25, %v5506_v51 }
 0x24b   : > { %4320 = vst.msk [vmem:[%s7225_s26 + $0x64] sm:$0xf] %vm4294_vm2, %v4948_v58  ;;  %v4130_v56 = vadd.f32 %v7208_v7, %v4091_v45  ;;  %v4092_v34 = vmax.f32 %v3738_v55, %v4051_v8 }
 0x24c   : > { %v4164_v61 = vmax.f32 %v4132_v57, 0.0  ;;  %v4133_v62 = vadd.f32 %v7208_v7, %v4094_v26 }
 0x24d   : > { %v4162_v42 = vmax.f32 %v4130_v56, 0.0  ;;  %v4131_v50 = vadd.f32 %v7208_v7, %v4092_v34 }
 0x24e   : > { %v4953_v28 = vpack.c.bf16 %v4164_v61, %v4164_v61  ;;  %v4165_v22 = vmax.f32 %v4133_v62, 0.0 }
 0x24f   : > { %v4951_v47 = vpack.c.bf16 %v4162_v42, %v4162_v42  ;;  %v4163_v30 = vmax.f32 %v4131_v50, 0.0 }
 0x250   : > { %4325 = vst.msk [vmem:[%s7225_s26 + $0x78] sm:$0xf] %vm4294_vm2, %v4953_v28  ;;  %v4954_v12 = vpack.c.bf16 %v4165_v22, %v4165_v22 }
 0x251   : > { %4323 = vst.msk [vmem:[%s7225_s26 + $0x70] sm:$0xf] %vm4294_vm2, %v4951_v47  ;;  %v4952_v10 = vpack.c.bf16 %v4163_v30, %v4163_v30 }
 0x252   : > { %4326 = vst.msk [vmem:[%s7225_s26 + $0x7c] sm:$0xf] %vm4294_vm2, %v4954_v12 }
 0x253   : > { %4324 = vst.msk [vmem:[%s7225_s26 + $0x74] sm:$0xf] %vm4294_vm2, %v4952_v10 }
 0x254 PF: > { %p10_p9 = scmp.ge.s32.totalorder %s5735_s16, 4   ;;  %s7637_s12 = smov %s5692_s13 }
 0x255   : > { %s7638_s13 = smov %s5744_s19  ;;  %s7639_s14 = smov %s5735_s16 }
 0x256   :  { %12 = sbr.rel (!%p10_p9) target bundleno = 2 (0x2), region = 115 }

</bundles_post_ra>
